<compile_context>
chip_gen: v7x
topology: tpu7x:2x2x1
jax: 0.10.0
libtpu: 0.0.40
codegen_flags: <defaults>
</compile_context>

<pallas_src>
import functools

import numpy as np
import jax
import jax.numpy as jnp
from jax import lax
from jax.experimental import pallas as pl
from jax.experimental.pallas import tpu as pltpu


# -----------------------------------------------------------------------------
# In-kernel helper: static zero-fill shift of a flat (C, H*W) map.
# -----------------------------------------------------------------------------
def _shift_flat(z, s, n):
    """out[:, o] = z[:, o + s] if 0 <= o + s < n else 0 (static shift s)."""
    if s == 0:
        return z
    pad = jnp.zeros((z.shape[0], abs(s)), z.dtype)
    if s > 0:
        return jnp.concatenate([z[:, s:], pad], axis=1)
    return jnp.concatenate([pad, z[:, :n + s]], axis=1)


# -----------------------------------------------------------------------------
# The fully fused IFBlock kernel (one grid step per batch element).
# -----------------------------------------------------------------------------
def _ifblock_kernel(xp_ref, w0_ref, b0_ref, a0_ref, w01_ref, b01_ref, a01_ref,
                    wcb_ref, bcb_ref, acb_ref, wt_ref, bt_ref, o_ref, patch_ref,
                    *, cin, c, H4, W4, n_cb):
    HW = H4 * W4
    c2 = 2 * c
    f32 = jnp.float32
    bf16 = jnp.bfloat16

    # Column-edge masks (1, HW).  Row bounds never need a mask: the zero-fill
    # shifts already produce zeros past the first/last row (review item 1).
    col = lax.broadcasted_iota(jnp.int32, (1, HW), 1) % W4
    m_col0 = (col != 0).astype(f32)       # zeroes column 0     (dx = +1 sources)
    m_colL = (col != W4 - 1).astype(f32)  # zeroes column W4-1  (dx = -1 sources)

    # ---- conv0[0]: 3x3 stride-2 conv + PReLU, one matmul per output phase ----
    # xp holds the 16 stride-4 polyphase planes of the channel-padded input:
    # plane (ry, rx)[ci, a, b] = x[ci, 4a + ry, 4b + rx].
    planes = {}
    for ry in range(4):
        for rx in range(4):
            base = (ry * 4 + rx) * cin
            planes[(ry, rx)] = xp_ref[0, base:base + cin, :]
    # Planes read with a column offset of -1 need their last column zeroed.
    planes_cm = {ry: planes[(ry, 3)] * m_colL for ry in range(4)}

    y1 = {}
    for py in range(2):
        for px in range(2):
            taps = []
            for ky in range(3):
                ty = 2 * py + ky - 1            # input row = 4a + ty
                qy = -1 if ty < 0 else 0
                ry = ty - 4 * qy
                for kx in range(3):
                    tx = 2 * px + kx - 1        # input col = 4b + tx
                    qx = -1 if tx < 0 else 0
                    rx = tx - 4 * qx
                    src = planes_cm[ry] if qx == -1 else planes[(ry, rx)]
                    taps.append(_shift_flat(src, qy * W4 + qx, HW))
            p = jnp.concatenate(taps, axis=0).astype(bf16)           # (9*cin, HW)
            v = jnp.dot(w0_ref[...], p, preferred_element_type=f32)
            v = v + b0_ref[...]
            y1[(py, px)] = jnp.where(v >= 0.0, v, v * a0_ref[...])   # (c, HW)

    # ---- conv0[1]: 3x3 stride-2 conv + PReLU from the 4 resident y1 phases ---
    y1_cm = {py: y1[(py, 1)] * m_colL for py in range(2)}            # dx=-1 srcs
    taps = []
    for ky in range(3):
        py = (ky + 1) % 2
        dy = (ky - 1 - py) // 2
        for kx in range(3):
            px = (kx + 1) % 2
            dx = (kx - 1 - px) // 2
            src = y1_cm[py] if dx == -1 else y1[(py, px)]
            taps.append(_shift_flat(src, dy * W4 + dx, HW))
    p = jnp.concatenate(taps, axis=0).astype(bf16)                   # (9*c, HW)
    z = jnp.dot(w01_ref[...], p, preferred_element_type=f32)
    z = z + b01_ref[...]
    z = jnp.where(z >= 0.0, z, z * a01_ref[...])                     # (2c, HW)

    # ---- 3x3 stride-1 im2col written into one reused bf16 VMEM scratch ------
    def write_patches(zz):
        z_dm = zz * m_colL        # source for dx = -1 taps
        z_dp = zz * m_col0        # source for dx = +1 taps
        t = 0
        for dy in (-1, 0, 1):
            for dx in (-1, 0, 1):
                src = z_dm if dx == -1 else (z_dp if dx == 1 else zz)
                patch_ref[pl.ds(t * c2, c2), :] = _shift_flat(
                    src, dy * W4 + dx, HW).astype(bf16)
                t += 1

    # ---- convblock: 6 x (3x3 conv + PReLU), weights stay VMEM resident ------
    def cb_body(i, zz):
        write_patches(zz)
        v = jnp.dot(wcb_ref[i], patch_ref[...], preferred_element_type=f32)
        v = v + bcb_ref[i]
        return jnp.where(v >= 0.0, v, v * acb_ref[i])

    z = lax.fori_loop(0, n_cb, cb_body, z)

    # ---- conv1: ConvTranspose2d(2c, out, 4, 2, 1) as stacked sub-pixel conv --
    write_patches(z)
    y = jnp.dot(wt_ref[...], patch_ref[...], preferred_element_type=f32)
    o_ref[0] = (y + bt_ref[...]).astype(o_ref.dtype)


# -----------------------------------------------------------------------------
# pallas_call wrapper.
# -----------------------------------------------------------------------------
def _full_spec(a):
    nd = a.ndim
    return pl.BlockSpec(a.shape, lambda *_: (0,) * nd)


def _ifblock_call(xp, pk, *, H4, W4):
    N = xp.shape[0]
    cin = pk["w0"].shape[1] // 9
    c = pk["w0"].shape[0]
    n_cb = pk["wcb"].shape[0]
    out4 = pk["wt"].shape[0]
    HW = H4 * W4
    kern = functools.partial(_ifblock_kernel, cin=cin, c=c, H4=H4, W4=W4,
                             n_cb=n_cb)
    return pl.pallas_call(
        kern,
        out_shape=jax.ShapeDtypeStruct((N, out4, HW), jnp.float32),
        grid_spec=pltpu.PrefetchScalarGridSpec(
            num_scalar_prefetch=0,
            grid=(N,),
            in_specs=[
                pl.BlockSpec((1, 16 * cin, HW), lambda n: (n, 0, 0)),
                _full_spec(pk["w0"]), _full_spec(pk["b0"]), _full_spec(pk["a0"]),
                _full_spec(pk["w01"]), _full_spec(pk["b01"]), _full_spec(pk["a01"]),
                _full_spec(pk["wcb"]), _full_spec(pk["bcb"]), _full_spec(pk["acb"]),
                _full_spec(pk["wt"]), _full_spec(pk["bt"]),
            ],
            out_specs=pl.BlockSpec((1, out4, HW), lambda n: (n, 0, 0)),
            scratch_shapes=[pltpu.VMEM((9 * 2 * c, HW), jnp.bfloat16)],
        ),
        compiler_params=pltpu.CompilerParams(
            dimension_semantics=("parallel",),
            vmem_limit_bytes=32 * 1024 * 1024),
    )(xp, pk["w0"], pk["b0"], pk["a0"], pk["w01"], pk["b01"], pk["a01"],
      pk["wcb"], pk["bcb"], pk["acb"], pk["wt"], pk["bt"])


# -----------------------------------------------------------------------------
# IFBlock forward (scale == 1): NCHW in / NCHW out, like the PyTorch module.
# -----------------------------------------------------------------------------
def _space_to_depth4(x):
    """NCHW (N,C,H,W) -> (N, 16*C, (H//4)*(W//4)); plane (ry,rx)[a,b]=x[4a+ry,4b+rx]."""
    N, C, H, W = x.shape
    x = x.reshape(N, C, H // 4, 4, W // 4, 4)
    x = jnp.transpose(x, (0, 3, 5, 1, 2, 4))          # (N, ry, rx, C, H4, W4)
    return x.reshape(N, 16 * C, (H // 4) * (W // 4))


def ifblock_forward(packed, x, scale=1):
    if scale != 1:
        # TODO(synk): bilinear F.interpolate for scale != 1 not implemented.
        raise NotImplementedError("only scale == 1 is supported")
    N, cin, H, W = x.shape
    assert H % 4 == 0 and W % 4 == 0
    H2, W2, H4, W4 = H // 2, W // 2, H // 4, W // 4

    cin_pad = packed["w0"].shape[1] // 9
    if cin_pad > cin:
        x = jnp.pad(x, ((0, 0), (0, cin_pad - cin), (0, 0), (0, 0)))
    xp = _space_to_depth4(x)                           # (N, 16*cin_pad, H4*W4)

    out4 = _ifblock_call(xp, packed, H4=H4, W4=W4)     # (N, 4*out, H4*W4)

    # Pixel-shuffle the 4 sub-pixel phases of the transposed conv (tiny, XLA).
    out_ch = packed["wt"].shape[0] // 4
    o = out4.reshape(N, 2, 2, out_ch, H4, W4)          # (N, r, s, co, a, b)
    o = jnp.transpose(o, (0, 3, 4, 1, 5, 2))           # (N, co, a, r, b, s)
    return o.reshape(N, out_ch, H2, W2)


# -----------------------------------------------------------------------------
# Synthetic parameters (PyTorch layouts) and one-time repacking for the kernel.
# -----------------------------------------------------------------------------
def init_ifblock_params(key, in_planes, c, num_flows, mode="backward"):
    def conv_p(k, cin, cout, ksz):
        k1, k2 = jax.random.split(k)
        w = jax.random.normal(k1, (cout, cin, ksz, ksz), jnp.float32)
        w = w * np.sqrt(2.0 / (ksz * ksz * cin))
        b = 0.01 * jax.random.normal(k2, (cout,), jnp.float32)
        a = 0.25 * jnp.ones((cout,), jnp.float32)       # PyTorch PReLU default
        return {"w": w, "b": b, "alpha": a}

    keys = jax.random.split(key, 10)
    p = {
        "conv0_0": conv_p(keys[0], in_planes, c, 3),
        "conv0_1": conv_p(keys[1], c, 2 * c, 3),
        "cb": [conv_p(keys[2 + i], 2 * c, 2 * c, 3) for i in range(6)],
    }
    if mode == "backward":
        out_ch = 2 * num_flows * 2
    elif mode == "forward":
        out_ch = 2 * num_flows * 3
    else:
        raise ValueError(mode)
    k1, k2 = jax.random.split(keys[8])
    # PyTorch ConvTranspose2d weight layout: (in_channels, out_channels, kH, kW)
    p["conv1_w"] = jax.random.normal(k1, (2 * c, out_ch, 4, 4), jnp.float32)
    p["conv1_w"] = p["conv1_w"] * np.sqrt(2.0 / (4 * 4 * 2 * c))
    p["conv1_b"] = 0.01 * jax.random.normal(k2, (out_ch,), jnp.float32)
    return p


def _pack_deconv(w_t, b_t):
    """ConvTranspose2d(cin, cout, 4, 2, 1) -> stacked sub-pixel (4*cout, 9*cin)
    bf16 weight.  Output phase (r, s) is a small conv of the input; its tap at
    row offset ty uses kernel row kmap[r][ty] (analogously for columns)."""
    cin, cout = w_t.shape[:2]
    kmap = ({0: 3, 1: 1}, {1: 2, 2: 0})                 # [phase][ty] -> k index
    w_np = np.asarray(w_t, np.float32)
    wt = np.zeros((4 * cout, 9 * cin), np.float32)
    for r in (0, 1):
        for s in (0, 1):
            rb = (r * 2 + s) * cout
            for ty in range(3):
                for tx in range(3):
                    if ty in kmap[r] and tx in kmap[s]:
                        ky, kx = kmap[r][ty], kmap[s][tx]
                        cb = (ty * 3 + tx) * cin
                        wt[rb:rb + cout, cb:cb + cin] = w_np[:, :, ky, kx].T
    bt = np.tile(np.asarray(b_t, np.float32), 4).reshape(4 * cout, 1)
    return jnp.asarray(wt, jnp.bfloat16), jnp.asarray(bt, jnp.float32)


def pack_params(p):
    """One-time repack of PyTorch-layout params into the kernel's matmul layouts
    (im2col, bf16 weights, channel padding of the first conv to a multiple of 8)."""
    def pack_conv(d, cin_pad=None):
        w = d["w"]
        cout, cin = w.shape[:2]
        if cin_pad is not None and cin_pad > cin:
            w = jnp.pad(w, ((0, 0), (0, cin_pad - cin), (0, 0), (0, 0)))
            cin = cin_pad
        wm = jnp.transpose(w, (0, 2, 3, 1)).reshape(cout, 9 * cin)
        return (wm.astype(jnp.bfloat16),
                d["b"].reshape(cout, 1).astype(jnp.float32),
                d["alpha"].reshape(cout, 1).astype(jnp.float32))

    in_planes = p["conv0_0"]["w"].shape[1]
    cin_pad = ((in_planes + 7) // 8) * 8
    w0, b0, a0 = pack_conv(p["conv0_0"], cin_pad)
    w01, b01, a01 = pack_conv(p["conv0_1"])
    wcb = jnp.stack([pack_conv(d)[0] for d in p["cb"]], axis=0)
    bcb = jnp.stack([d["b"].reshape(-1, 1).astype(jnp.float32) for d in p["cb"]], 0)
    acb = jnp.stack([d["alpha"].reshape(-1, 1).astype(jnp.float32) for d in p["cb"]], 0)
    wt, bt = _pack_deconv(p["conv1_w"], p["conv1_b"])
    return dict(w0=w0, b0=b0, a0=a0, w01=w01, b01=b01, a01=a01,
                wcb=wcb, bcb=bcb, acb=acb, wt=wt, bt=bt)


# -----------------------------------------------------------------------------
# Pure-XLA reference (mirrors the PyTorch module, with the same bf16 operand
# rounding as the kernel) for the correctness check.
# -----------------------------------------------------------------------------
def ifblock_reference(p, x):
    bf16 = jnp.bfloat16

    def conv(x, d, stride):
        y = lax.conv_general_dilated(
            x.astype(bf16), d["w"].astype(bf16), (stride, stride), ((1, 1), (1, 1)),
            dimension_numbers=("NCHW", "OIHW", "NCHW"),
            preferred_element_type=jnp.float32)
        y = y + d["b"].reshape(1, -1, 1, 1)
        return jnp.where(y >= 0, y, y * d["alpha"].reshape(1, -1, 1, 1))

    y = conv(x, p["conv0_0"], 2)
    y = conv(y, p["conv0_1"], 2)
    for d in p["cb"]:
        y = conv(y, d, 1)
    w = jnp.transpose(jnp.flip(p["conv1_w"], (2, 3)), (1, 0, 2, 3))
    fl = lax.conv_general_dilated(
        y.astype(bf16), w.astype(bf16), (1, 1), ((2, 2), (2, 2)), lhs_dilation=(2, 2),
        dimension_numbers=("NCHW", "OIHW", "NCHW"),
        preferred_element_type=jnp.float32)
    return fl + p["conv1_b"].reshape(1, -1, 1, 1)


if __name__ == "__main__":
    # Small deterministic config: in_planes=6 (two RGB frames), c=8, 3 flows.
    # 64x64 frames keep every in-kernel lane extent a multiple of 128.
    N, in_planes, H, W = 2, 6, 64, 64
    c, num_flows, mode = 8, 3, "backward"

    key = jax.random.PRNGKey(0)
    k_params, k_x = jax.random.split(key)
    params = init_ifblock_params(k_params, in_planes, c, num_flows, mode)
    packed = pack_params(params)
    x = jax.random.normal(k_x, (N, in_planes, H, W), jnp.float32)    # NCHW

    fwd = jax.jit(functools.partial(ifblock_forward, scale=1))
    flow = jax.block_until_ready(fwd(packed, x))

    expected_out_ch = 2 * num_flows * 2
    assert flow.shape == (N, expected_out_ch, H // 2, W // 2), flow.shape
    assert bool(jnp.all(jnp.isfinite(flow)))

    ref = jax.block_until_ready(jax.jit(ifblock_reference)(params, x))
    err = float(jnp.max(jnp.abs(flow - ref)))
    assert err < 3e-2, f"mismatch vs XLA reference: max abs err = {err}"
    print("KERNEL_OK")
</pallas_src>

<mosaic_0001>
module attributes {stable_mosaic.version = 11 : i64} {
  func.func @_ifblock_kernel(%arg0: i32, %arg1: memref<1x128x256xf32, #tpu.memory_space<vmem>>, %arg2: memref<8x72xbf16, #tpu.memory_space<vmem>>, %arg3: memref<8x1xf32, #tpu.memory_space<vmem>>, %arg4: memref<8x1xf32, #tpu.memory_space<vmem>>, %arg5: memref<16x72xbf16, #tpu.memory_space<vmem>>, %arg6: memref<16x1xf32, #tpu.memory_space<vmem>>, %arg7: memref<16x1xf32, #tpu.memory_space<vmem>>, %arg8: memref<6x16x144xbf16, #tpu.memory_space<vmem>>, %arg9: memref<6x16x1xf32, #tpu.memory_space<vmem>>, %arg10: memref<6x16x1xf32, #tpu.memory_space<vmem>>, %arg11: memref<48x144xbf16, #tpu.memory_space<vmem>>, %arg12: memref<48x1xf32, #tpu.memory_space<vmem>>, %arg13: memref<1x48x256xf32, #tpu.memory_space<vmem>>, %arg14: memref<144x256xbf16, #tpu.memory_space<vmem>>) attributes {dimension_semantics = [#tpu.dimension_semantics<parallel>], iteration_bounds = array<i64: 2>, scalar_prefetch = 0 : i64, scratch_operands = 1 : i64, tpu.core_type = #tpu.core_type<tc>, window_params = [{transform_indices = @transform_0, window_bounds = array<i64: 1, 128, 256>}, {pipeline_mode = #tpu.pipeline_mode<synchronous>, transform_indices = @transform_1, window_bounds = array<i64: 8, 72>}, {pipeline_mode = #tpu.pipeline_mode<synchronous>, transform_indices = @transform_2, window_bounds = array<i64: 8, 1>}, {pipeline_mode = #tpu.pipeline_mode<synchronous>, transform_indices = @transform_3, window_bounds = array<i64: 8, 1>}, {pipeline_mode = #tpu.pipeline_mode<synchronous>, transform_indices = @transform_4, window_bounds = array<i64: 16, 72>}, {pipeline_mode = #tpu.pipeline_mode<synchronous>, transform_indices = @transform_5, window_bounds = array<i64: 16, 1>}, {pipeline_mode = #tpu.pipeline_mode<synchronous>, transform_indices = @transform_6, window_bounds = array<i64: 16, 1>}, {pipeline_mode = #tpu.pipeline_mode<synchronous>, transform_indices = @transform_7, window_bounds = array<i64: 6, 16, 144>}, {pipeline_mode = #tpu.pipeline_mode<synchronous>, transform_indices = @transform_8, window_bounds = array<i64: 6, 16, 1>}, {pipeline_mode = #tpu.pipeline_mode<synchronous>, transform_indices = @transform_9, window_bounds = array<i64: 6, 16, 1>}, {pipeline_mode = #tpu.pipeline_mode<synchronous>, transform_indices = @transform_10, window_bounds = array<i64: 48, 144>}, {pipeline_mode = #tpu.pipeline_mode<synchronous>, transform_indices = @transform_11, window_bounds = array<i64: 48, 1>}, {transform_indices = @transform_12, window_bounds = array<i64: 1, 48, 256>}]} {
    %0 = tpu.iota {dimensions = array<i32: 1>} : vector<1x256xi32>
    %c16_i32 = arith.constant 16 : i32
    %c0_i32 = arith.constant 0 : i32
    %1 = arith.cmpi eq, %c16_i32, %c0_i32 : i32
    %c1_i32 = arith.constant 1 : i32
    %2 = arith.select %1, %c1_i32, %c16_i32 : i32
    %3 = vector.broadcast %2 : i32 to vector<1x256xi32>
    %4 = arith.remsi %0, %3 : vector<1x256xi32>
    %c0_i32_0 = arith.constant 0 : i32
    %5 = vector.broadcast %c0_i32_0 : i32 to vector<1x256xi32>
    %6 = arith.cmpi ne, %4, %5 : vector<1x256xi32>
    %c0_i32_1 = arith.constant 0 : i32
    %7 = vector.broadcast %c0_i32_1 : i32 to vector<1x256xi32>
    %8 = arith.cmpi slt, %4, %7 : vector<1x256xi32>
    %c0_i32_2 = arith.constant 0 : i32
    %9 = arith.cmpi slt, %2, %c0_i32_2 : i32
    %10 = vector.broadcast %9 : i1 to vector<1x256xi1>
    %11 = vector.broadcast %10 : vector<1x256xi1> to vector<1x256xi1>
    %12 = arith.xori %8, %11 : vector<1x256xi1>
    %13 = arith.andi %12, %6 : vector<1x256xi1>
    %14 = vector.broadcast %2 : i32 to vector<1x256xi32>
    %15 = arith.addi %4, %14 : vector<1x256xi32>
    %16 = arith.select %13, %15, %4 : vector<1x256xi1>, vector<1x256xi32>
    %c0_i32_3 = arith.constant 0 : i32
    %17 = vector.broadcast %c0_i32_3 : i32 to vector<1x256xi32>
    %18 = arith.cmpi ne, %16, %17 : vector<1x256xi32>
    %19 = arith.extui %18 : vector<1x256xi1> to vector<1x256xi32>
    %20 = arith.sitofp %19 : vector<1x256xi32> to vector<1x256xf32>
    %c15_i32 = arith.constant 15 : i32
    %21 = vector.broadcast %c15_i32 : i32 to vector<1x256xi32>
    %22 = arith.cmpi ne, %16, %21 : vector<1x256xi32>
    %23 = arith.extui %22 : vector<1x256xi1> to vector<1x256xi32>
    %24 = arith.sitofp %23 : vector<1x256xi32> to vector<1x256xf32>
    %c0 = arith.constant 0 : index
    %c0_4 = arith.constant 0 : index
    %c0_5 = arith.constant 0 : index
    %25 = vector.load %arg1[%c0, %c0_4, %c0_5] : memref<1x128x256xf32, #tpu.memory_space<vmem>>, vector<1x8x256xf32>
    %26 = vector.shape_cast %25 : vector<1x8x256xf32> to vector<8x256xf32>
    %c0_6 = arith.constant 0 : index
    %c8 = arith.constant 8 : index
    %c0_7 = arith.constant 0 : index
    %27 = vector.load %arg1[%c0_6, %c8, %c0_7] : memref<1x128x256xf32, #tpu.memory_space<vmem>>, vector<1x8x256xf32>
    %28 = vector.shape_cast %27 : vector<1x8x256xf32> to vector<8x256xf32>
    %c0_8 = arith.constant 0 : index
    %c16 = arith.constant 16 : index
    %c0_9 = arith.constant 0 : index
    %29 = vector.load %arg1[%c0_8, %c16, %c0_9] : memref<1x128x256xf32, #tpu.memory_space<vmem>>, vector<1x8x256xf32>
    %30 = vector.shape_cast %29 : vector<1x8x256xf32> to vector<8x256xf32>
    %c0_10 = arith.constant 0 : index
    %c24 = arith.constant 24 : index
    %c0_11 = arith.constant 0 : index
    %31 = vector.load %arg1[%c0_10, %c24, %c0_11] : memref<1x128x256xf32, #tpu.memory_space<vmem>>, vector<1x8x256xf32>
    %32 = vector.shape_cast %31 : vector<1x8x256xf32> to vector<8x256xf32>
    %c0_12 = arith.constant 0 : index
    %c32 = arith.constant 32 : index
    %c0_13 = arith.constant 0 : index
    %33 = vector.load %arg1[%c0_12, %c32, %c0_13] : memref<1x128x256xf32, #tpu.memory_space<vmem>>, vector<1x8x256xf32>
    %34 = vector.shape_cast %33 : vector<1x8x256xf32> to vector<8x256xf32>
    %c0_14 = arith.constant 0 : index
    %c40 = arith.constant 40 : index
    %c0_15 = arith.constant 0 : index
    %35 = vector.load %arg1[%c0_14, %c40, %c0_15] : memref<1x128x256xf32, #tpu.memory_space<vmem>>, vector<1x8x256xf32>
    %36 = vector.shape_cast %35 : vector<1x8x256xf32> to vector<8x256xf32>
    %c0_16 = arith.constant 0 : index
    %c48 = arith.constant 48 : index
    %c0_17 = arith.constant 0 : index
    %37 = vector.load %arg1[%c0_16, %c48, %c0_17] : memref<1x128x256xf32, #tpu.memory_space<vmem>>, vector<1x8x256xf32>
    %38 = vector.shape_cast %37 : vector<1x8x256xf32> to vector<8x256xf32>
    %c0_18 = arith.constant 0 : index
    %c56 = arith.constant 56 : index
    %c0_19 = arith.constant 0 : index
    %39 = vector.load %arg1[%c0_18, %c56, %c0_19] : memref<1x128x256xf32, #tpu.memory_space<vmem>>, vector<1x8x256xf32>
    %40 = vector.shape_cast %39 : vector<1x8x256xf32> to vector<8x256xf32>
    %c0_20 = arith.constant 0 : index
    %c64 = arith.constant 64 : index
    %c0_21 = arith.constant 0 : index
    %41 = vector.load %arg1[%c0_20, %c64, %c0_21] : memref<1x128x256xf32, #tpu.memory_space<vmem>>, vector<1x8x256xf32>
    %42 = vector.shape_cast %41 : vector<1x8x256xf32> to vector<8x256xf32>
    %c0_22 = arith.constant 0 : index
    %c72 = arith.constant 72 : index
    %c0_23 = arith.constant 0 : index
    %43 = vector.load %arg1[%c0_22, %c72, %c0_23] : memref<1x128x256xf32, #tpu.memory_space<vmem>>, vector<1x8x256xf32>
    %44 = vector.shape_cast %43 : vector<1x8x256xf32> to vector<8x256xf32>
    %c0_24 = arith.constant 0 : index
    %c80 = arith.constant 80 : index
    %c0_25 = arith.constant 0 : index
    %45 = vector.load %arg1[%c0_24, %c80, %c0_25] : memref<1x128x256xf32, #tpu.memory_space<vmem>>, vector<1x8x256xf32>
    %46 = vector.shape_cast %45 : vector<1x8x256xf32> to vector<8x256xf32>
    %c0_26 = arith.constant 0 : index
    %c88 = arith.constant 88 : index
    %c0_27 = arith.constant 0 : index
    %47 = vector.load %arg1[%c0_26, %c88, %c0_27] : memref<1x128x256xf32, #tpu.memory_space<vmem>>, vector<1x8x256xf32>
    %48 = vector.shape_cast %47 : vector<1x8x256xf32> to vector<8x256xf32>
    %c0_28 = arith.constant 0 : index
    %c96 = arith.constant 96 : index
    %c0_29 = arith.constant 0 : index
    %49 = vector.load %arg1[%c0_28, %c96, %c0_29] : memref<1x128x256xf32, #tpu.memory_space<vmem>>, vector<1x8x256xf32>
    %50 = vector.shape_cast %49 : vector<1x8x256xf32> to vector<8x256xf32>
    %c0_30 = arith.constant 0 : index
    %c104 = arith.constant 104 : index
    %c0_31 = arith.constant 0 : index
    %51 = vector.load %arg1[%c0_30, %c104, %c0_31] : memref<1x128x256xf32, #tpu.memory_space<vmem>>, vector<1x8x256xf32>
    %52 = vector.shape_cast %51 : vector<1x8x256xf32> to vector<8x256xf32>
    %c0_32 = arith.constant 0 : index
    %c112 = arith.constant 112 : index
    %c0_33 = arith.constant 0 : index
    %53 = vector.load %arg1[%c0_32, %c112, %c0_33] : memref<1x128x256xf32, #tpu.memory_space<vmem>>, vector<1x8x256xf32>
    %54 = vector.shape_cast %53 : vector<1x8x256xf32> to vector<8x256xf32>
    %c0_34 = arith.constant 0 : index
    %c120 = arith.constant 120 : index
    %c0_35 = arith.constant 0 : index
    %55 = vector.load %arg1[%c0_34, %c120, %c0_35] : memref<1x128x256xf32, #tpu.memory_space<vmem>>, vector<1x8x256xf32>
    %56 = vector.shape_cast %55 : vector<1x8x256xf32> to vector<8x256xf32>
    %57 = vector.broadcast %24 : vector<1x256xf32> to vector<8x256xf32>
    %58 = arith.mulf %32, %57 : vector<8x256xf32>
    %59 = vector.broadcast %24 : vector<1x256xf32> to vector<8x256xf32>
    %60 = arith.mulf %40, %59 : vector<8x256xf32>
    %61 = vector.broadcast %24 : vector<1x256xf32> to vector<8x256xf32>
    %62 = arith.mulf %48, %61 : vector<8x256xf32>
    %63 = vector.broadcast %24 : vector<1x256xf32> to vector<8x256xf32>
    %64 = arith.mulf %56, %63 : vector<8x256xf32>
    %cst = arith.constant 0.000000e+00 : f32
    %65 = vector.broadcast %cst : f32 to vector<8x17xf32>
    %66 = vector.extract_strided_slice %64 {offsets = [0, 0], sizes = [8, 239], strides = [1, 1]} : vector<8x256xf32> to vector<8x239xf32>
    %67 = tpu.concatenate %65, %66 in 1 : vector<8x17xf32>, vector<8x239xf32> -> vector<8x256xf32>
    %cst_36 = arith.constant 0.000000e+00 : f32
    %68 = vector.broadcast %cst_36 : f32 to vector<8x16xf32>
    %69 = vector.extract_strided_slice %50 {offsets = [0, 0], sizes = [8, 240], strides = [1, 1]} : vector<8x256xf32> to vector<8x240xf32>
    %70 = tpu.concatenate %68, %69 in 1 : vector<8x16xf32>, vector<8x240xf32> -> vector<8x256xf32>
    %cst_37 = arith.constant 0.000000e+00 : f32
    %71 = vector.broadcast %cst_37 : f32 to vector<8x16xf32>
    %72 = vector.extract_strided_slice %52 {offsets = [0, 0], sizes = [8, 240], strides = [1, 1]} : vector<8x256xf32> to vector<8x240xf32>
    %73 = tpu.concatenate %71, %72 in 1 : vector<8x16xf32>, vector<8x240xf32> -> vector<8x256xf32>
    %cst_38 = arith.constant 0.000000e+00 : f32
    %74 = vector.broadcast %cst_38 : f32 to vector<8x1xf32>
    %75 = vector.extract_strided_slice %58 {offsets = [0, 0], sizes = [8, 255], strides = [1, 1]} : vector<8x256xf32> to vector<8x255xf32>
    %76 = tpu.concatenate %74, %75 in 1 : vector<8x1xf32>, vector<8x255xf32> -> vector<8x256xf32>
    %cst_39 = arith.constant 0.000000e+00 : f32
    %77 = vector.broadcast %cst_39 : f32 to vector<8x1xf32>
    %78 = vector.extract_strided_slice %60 {offsets = [0, 0], sizes = [8, 255], strides = [1, 1]} : vector<8x256xf32> to vector<8x255xf32>
    %79 = tpu.concatenate %77, %78 in 1 : vector<8x1xf32>, vector<8x255xf32> -> vector<8x256xf32>
    %80 = tpu.concatenate %67, %70, %73, %76, %26, %28, %79, %34, %36 in 0 : vector<8x256xf32>, vector<8x256xf32>, vector<8x256xf32>, vector<8x256xf32>, vector<8x256xf32>, vector<8x256xf32>, vector<8x256xf32>, vector<8x256xf32>, vector<8x256xf32> -> vector<72x256xf32>
    %81 = arith.truncf %80 : vector<72x256xf32> to vector<72x256xbf16>
    %c0_40 = arith.constant 0 : index
    %c0_41 = arith.constant 0 : index
    %82 = vector.load %arg2[%c0_40, %c0_41] : memref<8x72xbf16, #tpu.memory_space<vmem>>, vector<8x72xbf16>
    %cst_42 = arith.constant dense<0.000000e+00> : vector<8x256xf32>
    %83 = tpu.matmul %82, %81, %cst_42 {dimension_numbers = #tpu.dot_dimension_numbers<[1], [0], [0], [1], [0, 0, 1, 1], [], []>} : vector<8x72xbf16>, vector<72x256xbf16>, vector<8x256xf32> -> vector<8x256xf32>
    %c0_43 = arith.constant 0 : index
    %c0_44 = arith.constant 0 : index
    %84 = vector.load %arg3[%c0_43, %c0_44] : memref<8x1xf32, #tpu.memory_space<vmem>>, vector<8x1xf32>
    %85 = vector.broadcast %84 : vector<8x1xf32> to vector<8x256xf32>
    %86 = arith.addf %83, %85 : vector<8x256xf32>
    %cst_45 = arith.constant 0.000000e+00 : f32
    %87 = vector.broadcast %cst_45 : f32 to vector<8x256xf32>
    %88 = arith.cmpf oge, %86, %87 : vector<8x256xf32>
    %c0_46 = arith.constant 0 : index
    %c0_47 = arith.constant 0 : index
    %89 = vector.load %arg4[%c0_46, %c0_47] : memref<8x1xf32, #tpu.memory_space<vmem>>, vector<8x1xf32>
    %90 = vector.broadcast %89 : vector<8x1xf32> to vector<8x256xf32>
    %91 = arith.mulf %86, %90 : vector<8x256xf32>
    %92 = arith.select %88, %86, %91 : vector<8x256xi1>, vector<8x256xf32>
    %cst_48 = arith.constant 0.000000e+00 : f32
    %93 = vector.broadcast %cst_48 : f32 to vector<8x16xf32>
    %94 = vector.extract_strided_slice %52 {offsets = [0, 0], sizes = [8, 240], strides = [1, 1]} : vector<8x256xf32> to vector<8x240xf32>
    %95 = tpu.concatenate %93, %94 in 1 : vector<8x16xf32>, vector<8x240xf32> -> vector<8x256xf32>
    %cst_49 = arith.constant 0.000000e+00 : f32
    %96 = vector.broadcast %cst_49 : f32 to vector<8x16xf32>
    %97 = vector.extract_strided_slice %54 {offsets = [0, 0], sizes = [8, 240], strides = [1, 1]} : vector<8x256xf32> to vector<8x240xf32>
    %98 = tpu.concatenate %96, %97 in 1 : vector<8x16xf32>, vector<8x240xf32> -> vector<8x256xf32>
    %cst_50 = arith.constant 0.000000e+00 : f32
    %99 = vector.broadcast %cst_50 : f32 to vector<8x16xf32>
    %100 = vector.extract_strided_slice %56 {offsets = [0, 0], sizes = [8, 240], strides = [1, 1]} : vector<8x256xf32> to vector<8x240xf32>
    %101 = tpu.concatenate %99, %100 in 1 : vector<8x16xf32>, vector<8x240xf32> -> vector<8x256xf32>
    %102 = tpu.concatenate %95, %98, %101, %28, %30, %32, %36, %38, %40 in 0 : vector<8x256xf32>, vector<8x256xf32>, vector<8x256xf32>, vector<8x256xf32>, vector<8x256xf32>, vector<8x256xf32>, vector<8x256xf32>, vector<8x256xf32>, vector<8x256xf32> -> vector<72x256xf32>
    %103 = arith.truncf %102 : vector<72x256xf32> to vector<72x256xbf16>
    %c0_51 = arith.constant 0 : index
    %c0_52 = arith.constant 0 : index
    %104 = vector.load %arg2[%c0_51, %c0_52] : memref<8x72xbf16, #tpu.memory_space<vmem>>, vector<8x72xbf16>
    %cst_53 = arith.constant dense<0.000000e+00> : vector<8x256xf32>
    %105 = tpu.matmul %104, %103, %cst_53 {dimension_numbers = #tpu.dot_dimension_numbers<[1], [0], [0], [1], [0, 0, 1, 1], [], []>} : vector<8x72xbf16>, vector<72x256xbf16>, vector<8x256xf32> -> vector<8x256xf32>
    %c0_54 = arith.constant 0 : index
    %c0_55 = arith.constant 0 : index
    %106 = vector.load %arg3[%c0_54, %c0_55] : memref<8x1xf32, #tpu.memory_space<vmem>>, vector<8x1xf32>
    %107 = vector.broadcast %106 : vector<8x1xf32> to vector<8x256xf32>
    %108 = arith.addf %105, %107 : vector<8x256xf32>
    %cst_56 = arith.constant 0.000000e+00 : f32
    %109 = vector.broadcast %cst_56 : f32 to vector<8x256xf32>
    %110 = arith.cmpf oge, %108, %109 : vector<8x256xf32>
    %c0_57 = arith.constant 0 : index
    %c0_58 = arith.constant 0 : index
    %111 = vector.load %arg4[%c0_57, %c0_58] : memref<8x1xf32, #tpu.memory_space<vmem>>, vector<8x1xf32>
    %112 = vector.broadcast %111 : vector<8x1xf32> to vector<8x256xf32>
    %113 = arith.mulf %108, %112 : vector<8x256xf32>
    %114 = arith.select %110, %108, %113 : vector<8x256xi1>, vector<8x256xf32>
    %cst_59 = arith.constant 0.000000e+00 : f32
    %115 = vector.broadcast %cst_59 : f32 to vector<8x1xf32>
    %116 = vector.extract_strided_slice %60 {offsets = [0, 0], sizes = [8, 255], strides = [1, 1]} : vector<8x256xf32> to vector<8x255xf32>
    %117 = tpu.concatenate %115, %116 in 1 : vector<8x1xf32>, vector<8x255xf32> -> vector<8x256xf32>
    %cst_60 = arith.constant 0.000000e+00 : f32
    %118 = vector.broadcast %cst_60 : f32 to vector<8x1xf32>
    %119 = vector.extract_strided_slice %62 {offsets = [0, 0], sizes = [8, 255], strides = [1, 1]} : vector<8x256xf32> to vector<8x255xf32>
    %120 = tpu.concatenate %118, %119 in 1 : vector<8x1xf32>, vector<8x255xf32> -> vector<8x256xf32>
    %cst_61 = arith.constant 0.000000e+00 : f32
    %121 = vector.broadcast %cst_61 : f32 to vector<8x1xf32>
    %122 = vector.extract_strided_slice %64 {offsets = [0, 0], sizes = [8, 255], strides = [1, 1]} : vector<8x256xf32> to vector<8x255xf32>
    %123 = tpu.concatenate %121, %122 in 1 : vector<8x1xf32>, vector<8x255xf32> -> vector<8x256xf32>
    %124 = tpu.concatenate %117, %34, %36, %120, %42, %44, %123, %50, %52 in 0 : vector<8x256xf32>, vector<8x256xf32>, vector<8x256xf32>, vector<8x256xf32>, vector<8x256xf32>, vector<8x256xf32>, vector<8x256xf32>, vector<8x256xf32>, vector<8x256xf32> -> vector<72x256xf32>
    %125 = arith.truncf %124 : vector<72x256xf32> to vector<72x256xbf16>
    %c0_62 = arith.constant 0 : index
    %c0_63 = arith.constant 0 : index
    %126 = vector.load %arg2[%c0_62, %c0_63] : memref<8x72xbf16, #tpu.memory_space<vmem>>, vector<8x72xbf16>
    %cst_64 = arith.constant dense<0.000000e+00> : vector<8x256xf32>
    %127 = tpu.matmul %126, %125, %cst_64 {dimension_numbers = #tpu.dot_dimension_numbers<[1], [0], [0], [1], [0, 0, 1, 1], [], []>} : vector<8x72xbf16>, vector<72x256xbf16>, vector<8x256xf32> -> vector<8x256xf32>
    %c0_65 = arith.constant 0 : index
    %c0_66 = arith.constant 0 : index
    %128 = vector.load %arg3[%c0_65, %c0_66] : memref<8x1xf32, #tpu.memory_space<vmem>>, vector<8x1xf32>
    %129 = vector.broadcast %128 : vector<8x1xf32> to vector<8x256xf32>
    %130 = arith.addf %127, %129 : vector<8x256xf32>
    %cst_67 = arith.constant 0.000000e+00 : f32
    %131 = vector.broadcast %cst_67 : f32 to vector<8x256xf32>
    %132 = arith.cmpf oge, %130, %131 : vector<8x256xf32>
    %c0_68 = arith.constant 0 : index
    %c0_69 = arith.constant 0 : index
    %133 = vector.load %arg4[%c0_68, %c0_69] : memref<8x1xf32, #tpu.memory_space<vmem>>, vector<8x1xf32>
    %134 = vector.broadcast %133 : vector<8x1xf32> to vector<8x256xf32>
    %135 = arith.mulf %130, %134 : vector<8x256xf32>
    %136 = arith.select %132, %130, %135 : vector<8x256xi1>, vector<8x256xf32>
    %137 = tpu.concatenate %36, %38, %40, %44, %46, %48, %52, %54, %56 in 0 : vector<8x256xf32>, vector<8x256xf32>, vector<8x256xf32>, vector<8x256xf32>, vector<8x256xf32>, vector<8x256xf32>, vector<8x256xf32>, vector<8x256xf32>, vector<8x256xf32> -> vector<72x256xf32>
    %138 = arith.truncf %137 : vector<72x256xf32> to vector<72x256xbf16>
    %c0_70 = arith.constant 0 : index
    %c0_71 = arith.constant 0 : index
    %139 = vector.load %arg2[%c0_70, %c0_71] : memref<8x72xbf16, #tpu.memory_space<vmem>>, vector<8x72xbf16>
    %cst_72 = arith.constant dense<0.000000e+00> : vector<8x256xf32>
    %140 = tpu.matmul %139, %138, %cst_72 {dimension_numbers = #tpu.dot_dimension_numbers<[1], [0], [0], [1], [0, 0, 1, 1], [], []>} : vector<8x72xbf16>, vector<72x256xbf16>, vector<8x256xf32> -> vector<8x256xf32>
    %c0_73 = arith.constant 0 : index
    %c0_74 = arith.constant 0 : index
    %141 = vector.load %arg3[%c0_73, %c0_74] : memref<8x1xf32, #tpu.memory_space<vmem>>, vector<8x1xf32>
    %142 = vector.broadcast %141 : vector<8x1xf32> to vector<8x256xf32>
    %143 = arith.addf %140, %142 : vector<8x256xf32>
    %cst_75 = arith.constant 0.000000e+00 : f32
    %144 = vector.broadcast %cst_75 : f32 to vector<8x256xf32>
    %145 = arith.cmpf oge, %143, %144 : vector<8x256xf32>
    %c0_76 = arith.constant 0 : index
    %c0_77 = arith.constant 0 : index
    %146 = vector.load %arg4[%c0_76, %c0_77] : memref<8x1xf32, #tpu.memory_space<vmem>>, vector<8x1xf32>
    %147 = vector.broadcast %146 : vector<8x1xf32> to vector<8x256xf32>
    %148 = arith.mulf %143, %147 : vector<8x256xf32>
    %149 = arith.select %145, %143, %148 : vector<8x256xi1>, vector<8x256xf32>
    %150 = vector.broadcast %24 : vector<1x256xf32> to vector<8x256xf32>
    %151 = arith.mulf %114, %150 : vector<8x256xf32>
    %152 = vector.broadcast %24 : vector<1x256xf32> to vector<8x256xf32>
    %153 = arith.mulf %149, %152 : vector<8x256xf32>
    %cst_78 = arith.constant 0.000000e+00 : f32
    %154 = vector.broadcast %cst_78 : f32 to vector<8x17xf32>
    %155 = vector.extract_strided_slice %153 {offsets = [0, 0], sizes = [8, 239], strides = [1, 1]} : vector<8x256xf32> to vector<8x239xf32>
    %156 = tpu.concatenate %154, %155 in 1 : vector<8x17xf32>, vector<8x239xf32> -> vector<8x256xf32>
    %cst_79 = arith.constant 0.000000e+00 : f32
    %157 = vector.broadcast %cst_79 : f32 to vector<8x16xf32>
    %158 = vector.extract_strided_slice %136 {offsets = [0, 0], sizes = [8, 240], strides = [1, 1]} : vector<8x256xf32> to vector<8x240xf32>
    %159 = tpu.concatenate %157, %158 in 1 : vector<8x16xf32>, vector<8x240xf32> -> vector<8x256xf32>
    %cst_80 = arith.constant 0.000000e+00 : f32
    %160 = vector.broadcast %cst_80 : f32 to vector<8x16xf32>
    %161 = vector.extract_strided_slice %149 {offsets = [0, 0], sizes = [8, 240], strides = [1, 1]} : vector<8x256xf32> to vector<8x240xf32>
    %162 = tpu.concatenate %160, %161 in 1 : vector<8x16xf32>, vector<8x240xf32> -> vector<8x256xf32>
    %cst_81 = arith.constant 0.000000e+00 : f32
    %163 = vector.broadcast %cst_81 : f32 to vector<8x1xf32>
    %164 = vector.extract_strided_slice %151 {offsets = [0, 0], sizes = [8, 255], strides = [1, 1]} : vector<8x256xf32> to vector<8x255xf32>
    %165 = tpu.concatenate %163, %164 in 1 : vector<8x1xf32>, vector<8x255xf32> -> vector<8x256xf32>
    %cst_82 = arith.constant 0.000000e+00 : f32
    %166 = vector.broadcast %cst_82 : f32 to vector<8x1xf32>
    %167 = vector.extract_strided_slice %153 {offsets = [0, 0], sizes = [8, 255], strides = [1, 1]} : vector<8x256xf32> to vector<8x255xf32>
    %168 = tpu.concatenate %166, %167 in 1 : vector<8x1xf32>, vector<8x255xf32> -> vector<8x256xf32>
    %169 = tpu.concatenate %156, %159, %162, %165, %92, %114, %168, %136, %149 in 0 : vector<8x256xf32>, vector<8x256xf32>, vector<8x256xf32>, vector<8x256xf32>, vector<8x256xf32>, vector<8x256xf32>, vector<8x256xf32>, vector<8x256xf32>, vector<8x256xf32> -> vector<72x256xf32>
    %170 = arith.truncf %169 : vector<72x256xf32> to vector<72x256xbf16>
    %c0_83 = arith.constant 0 : index
    %c0_84 = arith.constant 0 : index
    %171 = vector.load %arg5[%c0_83, %c0_84] : memref<16x72xbf16, #tpu.memory_space<vmem>>, vector<16x72xbf16>
    %cst_85 = arith.constant dense<0.000000e+00> : vector<16x256xf32>
    %172 = tpu.matmul %171, %170, %cst_85 {dimension_numbers = #tpu.dot_dimension_numbers<[1], [0], [0], [1], [0, 0, 1, 1], [], []>} : vector<16x72xbf16>, vector<72x256xbf16>, vector<16x256xf32> -> vector<16x256xf32>
    %c0_86 = arith.constant 0 : index
    %c0_87 = arith.constant 0 : index
    %173 = vector.load %arg6[%c0_86, %c0_87] : memref<16x1xf32, #tpu.memory_space<vmem>>, vector<16x1xf32>
    %174 = vector.broadcast %173 : vector<16x1xf32> to vector<16x256xf32>
    %175 = arith.addf %172, %174 : vector<16x256xf32>
    %cst_88 = arith.constant 0.000000e+00 : f32
    %176 = vector.broadcast %cst_88 : f32 to vector<16x256xf32>
    %177 = arith.cmpf oge, %175, %176 : vector<16x256xf32>
    %c0_89 = arith.constant 0 : index
    %c0_90 = arith.constant 0 : index
    %178 = vector.load %arg7[%c0_89, %c0_90] : memref<16x1xf32, #tpu.memory_space<vmem>>, vector<16x1xf32>
    %179 = vector.broadcast %178 : vector<16x1xf32> to vector<16x256xf32>
    %180 = arith.mulf %175, %179 : vector<16x256xf32>
    %181 = arith.select %177, %175, %180 : vector<16x256xi1>, vector<16x256xf32>
    %c0_i32_91 = arith.constant 0 : i32
    %c6_i32 = arith.constant 6 : i32
    %182 = arith.addi %c0_i32_91, %c6_i32 : i32
    %c1_i32_92 = arith.constant 1 : i32
    %183 = scf.for %arg15 = %c0_i32_91 to %182 step %c1_i32_92 iter_args(%arg16 = %181) -> (vector<16x256xf32>)  : i32 {
      %239 = vector.broadcast %24 : vector<1x256xf32> to vector<16x256xf32>
      %240 = arith.mulf %arg16, %239 : vector<16x256xf32>
      %241 = vector.broadcast %20 : vector<1x256xf32> to vector<16x256xf32>
      %242 = arith.mulf %arg16, %241 : vector<16x256xf32>
      %cst_129 = arith.constant 0.000000e+00 : f32
      %243 = vector.broadcast %cst_129 : f32 to vector<16x17xf32>
      %244 = vector.extract_strided_slice %240 {offsets = [0, 0], sizes = [16, 239], strides = [1, 1]} : vector<16x256xf32> to vector<16x239xf32>
      %245 = tpu.concatenate %243, %244 in 1 : vector<16x17xf32>, vector<16x239xf32> -> vector<16x256xf32>
      %246 = arith.truncf %245 : vector<16x256xf32> to vector<16x256xbf16>
      %c0_130 = arith.constant 0 : index
      %c0_131 = arith.constant 0 : index
      %247 = vector.load %arg14[%c0_130, %c0_131] : memref<144x256xbf16, #tpu.memory_space<vmem>>, vector<16x256xbf16>
      tpu.vector_store %arg14[%c0_130, %c0_131], %246 {strides = array<i32>} : memref<144x256xbf16, #tpu.memory_space<vmem>>, vector<16x256xbf16>,
      %cst_132 = arith.constant 0.000000e+00 : f32
      %248 = vector.broadcast %cst_132 : f32 to vector<16x16xf32>
      %249 = vector.extract_strided_slice %arg16 {offsets = [0, 0], sizes = [16, 240], strides = [1, 1]} : vector<16x256xf32> to vector<16x240xf32>
      %250 = tpu.concatenate %248, %249 in 1 : vector<16x16xf32>, vector<16x240xf32> -> vector<16x256xf32>
      %251 = arith.truncf %250 : vector<16x256xf32> to vector<16x256xbf16>
      %c16_133 = arith.constant 16 : index
      %c0_134 = arith.constant 0 : index
      %252 = vector.load %arg14[%c16_133, %c0_134] : memref<144x256xbf16, #tpu.memory_space<vmem>>, vector<16x256xbf16>
      tpu.vector_store %arg14[%c16_133, %c0_134], %251 {strides = array<i32>} : memref<144x256xbf16, #tpu.memory_space<vmem>>, vector<16x256xbf16>,
      %cst_135 = arith.constant 0.000000e+00 : f32
      %253 = vector.broadcast %cst_135 : f32 to vector<16x15xf32>
      %254 = vector.extract_strided_slice %242 {offsets = [0, 0], sizes = [16, 241], strides = [1, 1]} : vector<16x256xf32> to vector<16x241xf32>
      %255 = tpu.concatenate %253, %254 in 1 : vector<16x15xf32>, vector<16x241xf32> -> vector<16x256xf32>
      %256 = arith.truncf %255 : vector<16x256xf32> to vector<16x256xbf16>
      %c32_136 = arith.constant 32 : index
      %c0_137 = arith.constant 0 : index
      %257 = vector.load %arg14[%c32_136, %c0_137] : memref<144x256xbf16, #tpu.memory_space<vmem>>, vector<16x256xbf16>
      tpu.vector_store %arg14[%c32_136, %c0_137], %256 {strides = array<i32>} : memref<144x256xbf16, #tpu.memory_space<vmem>>, vector<16x256xbf16>,
      %cst_138 = arith.constant 0.000000e+00 : f32
      %258 = vector.broadcast %cst_138 : f32 to vector<16x1xf32>
      %259 = vector.extract_strided_slice %240 {offsets = [0, 0], sizes = [16, 255], strides = [1, 1]} : vector<16x256xf32> to vector<16x255xf32>
      %260 = tpu.concatenate %258, %259 in 1 : vector<16x1xf32>, vector<16x255xf32> -> vector<16x256xf32>
      %261 = arith.truncf %260 : vector<16x256xf32> to vector<16x256xbf16>
      %c48_139 = arith.constant 48 : index
      %c0_140 = arith.constant 0 : index
      %262 = vector.load %arg14[%c48_139, %c0_140] : memref<144x256xbf16, #tpu.memory_space<vmem>>, vector<16x256xbf16>
      tpu.vector_store %arg14[%c48_139, %c0_140], %261 {strides = array<i32>} : memref<144x256xbf16, #tpu.memory_space<vmem>>, vector<16x256xbf16>,
      %263 = arith.truncf %arg16 : vector<16x256xf32> to vector<16x256xbf16>
      %c64_141 = arith.constant 64 : index
      %c0_142 = arith.constant 0 : index
      %264 = vector.load %arg14[%c64_141, %c0_142] : memref<144x256xbf16, #tpu.memory_space<vmem>>, vector<16x256xbf16>
      tpu.vector_store %arg14[%c64_141, %c0_142], %263 {strides = array<i32>} : memref<144x256xbf16, #tpu.memory_space<vmem>>, vector<16x256xbf16>,
      %cst_143 = arith.constant 0.000000e+00 : f32
      %265 = vector.broadcast %cst_143 : f32 to vector<16x1xf32>
      %266 = vector.extract_strided_slice %242 {offsets = [0, 1], sizes = [16, 255], strides = [1, 1]} : vector<16x256xf32> to vector<16x255xf32>
      %267 = tpu.concatenate %266, %265 in 1 : vector<16x255xf32>, vector<16x1xf32> -> vector<16x256xf32>
      %268 = arith.truncf %267 : vector<16x256xf32> to vector<16x256xbf16>
      %c80_144 = arith.constant 80 : index
      %c0_145 = arith.constant 0 : index
      %269 = vector.load %arg14[%c80_144, %c0_145] : memref<144x256xbf16, #tpu.memory_space<vmem>>, vector<16x256xbf16>
      tpu.vector_store %arg14[%c80_144, %c0_145], %268 {strides = array<i32>} : memref<144x256xbf16, #tpu.memory_space<vmem>>, vector<16x256xbf16>,
      %cst_146 = arith.constant 0.000000e+00 : f32
      %270 = vector.broadcast %cst_146 : f32 to vector<16x15xf32>
      %271 = vector.extract_strided_slice %240 {offsets = [0, 15], sizes = [16, 241], strides = [1, 1]} : vector<16x256xf32> to vector<16x241xf32>
      %272 = tpu.concatenate %271, %270 in 1 : vector<16x241xf32>, vector<16x15xf32> -> vector<16x256xf32>
      %273 = arith.truncf %272 : vector<16x256xf32> to vector<16x256xbf16>
      %c96_147 = arith.constant 96 : index
      %c0_148 = arith.constant 0 : index
      %274 = vector.load %arg14[%c96_147, %c0_148] : memref<144x256xbf16, #tpu.memory_space<vmem>>, vector<16x256xbf16>
      tpu.vector_store %arg14[%c96_147, %c0_148], %273 {strides = array<i32>} : memref<144x256xbf16, #tpu.memory_space<vmem>>, vector<16x256xbf16>,
      %cst_149 = arith.constant 0.000000e+00 : f32
      %275 = vector.broadcast %cst_149 : f32 to vector<16x16xf32>
      %276 = vector.extract_strided_slice %arg16 {offsets = [0, 16], sizes = [16, 240], strides = [1, 1]} : vector<16x256xf32> to vector<16x240xf32>
      %277 = tpu.concatenate %276, %275 in 1 : vector<16x240xf32>, vector<16x16xf32> -> vector<16x256xf32>
      %278 = arith.truncf %277 : vector<16x256xf32> to vector<16x256xbf16>
      %c112_150 = arith.constant 112 : index
      %c0_151 = arith.constant 0 : index
      %279 = vector.load %arg14[%c112_150, %c0_151] : memref<144x256xbf16, #tpu.memory_space<vmem>>, vector<16x256xbf16>
      tpu.vector_store %arg14[%c112_150, %c0_151], %278 {strides = array<i32>} : memref<144x256xbf16, #tpu.memory_space<vmem>>, vector<16x256xbf16>,
      %cst_152 = arith.constant 0.000000e+00 : f32
      %280 = vector.broadcast %cst_152 : f32 to vector<16x17xf32>
      %281 = vector.extract_strided_slice %242 {offsets = [0, 17], sizes = [16, 239], strides = [1, 1]} : vector<16x256xf32> to vector<16x239xf32>
      %282 = tpu.concatenate %281, %280 in 1 : vector<16x239xf32>, vector<16x17xf32> -> vector<16x256xf32>
      %283 = arith.truncf %282 : vector<16x256xf32> to vector<16x256xbf16>
      %c128_153 = arith.constant 128 : index
      %c0_154 = arith.constant 0 : index
      %284 = vector.load %arg14[%c128_153, %c0_154] : memref<144x256xbf16, #tpu.memory_space<vmem>>, vector<16x256xbf16>
      tpu.vector_store %arg14[%c128_153, %c0_154], %283 {strides = array<i32>} : memref<144x256xbf16, #tpu.memory_space<vmem>>, vector<16x256xbf16>,
      %285 = arith.index_cast %arg15 : i32 to index
      %c0_155 = arith.constant 0 : index
      %c0_156 = arith.constant 0 : index
      %286 = vector.load %arg8[%285, %c0_155, %c0_156] : memref<6x16x144xbf16, #tpu.memory_space<vmem>>, vector<1x16x144xbf16>
      %287 = vector.shape_cast %286 : vector<1x16x144xbf16> to vector<16x144xbf16>
      %c0_157 = arith.constant 0 : index
      %c0_158 = arith.constant 0 : index
      %288 = vector.load %arg14[%c0_157, %c0_158] : memref<144x256xbf16, #tpu.memory_space<vmem>>, vector<144x256xbf16>
      %cst_159 = arith.constant dense<0.000000e+00> : vector<16x256xf32>
      %289 = tpu.matmul %287, %288, %cst_159 {dimension_numbers = #tpu.dot_dimension_numbers<[1], [0], [0], [1], [0, 0, 1, 1], [], []>} : vector<16x144xbf16>, vector<144x256xbf16>, vector<16x256xf32> -> vector<16x256xf32>
      %290 = arith.index_cast %arg15 : i32 to index
      %c0_160 = arith.constant 0 : index
      %c0_161 = arith.constant 0 : index
      %291 = vector.load %arg9[%290, %c0_160, %c0_161] : memref<6x16x1xf32, #tpu.memory_space<vmem>>, vector<1x16x1xf32>
      %292 = vector.shape_cast %291 : vector<1x16x1xf32> to vector<16x1xf32>
      %293 = vector.broadcast %292 : vector<16x1xf32> to vector<16x256xf32>
      %294 = arith.addf %289, %293 : vector<16x256xf32>
      %cst_162 = arith.constant 0.000000e+00 : f32
      %295 = vector.broadcast %cst_162 : f32 to vector<16x256xf32>
      %296 = arith.cmpf oge, %294, %295 : vector<16x256xf32>
      %297 = arith.index_cast %arg15 : i32 to index
      %c0_163 = arith.constant 0 : index
      %c0_164 = arith.constant 0 : index
      %298 = vector.load %arg10[%297, %c0_163, %c0_164] : memref<6x16x1xf32, #tpu.memory_space<vmem>>, vector<1x16x1xf32>
      %299 = vector.shape_cast %298 : vector<1x16x1xf32> to vector<16x1xf32>
      %300 = vector.broadcast %299 : vector<16x1xf32> to vector<16x256xf32>
      %301 = arith.mulf %294, %300 : vector<16x256xf32>
      %302 = arith.select %296, %294, %301 : vector<16x256xi1>, vector<16x256xf32>
      scf.yield %302 : vector<16x256xf32>
    }
    %c6_i32_93 = arith.constant 6 : i32
    %184 = vector.broadcast %24 : vector<1x256xf32> to vector<16x256xf32>
    %185 = arith.mulf %183, %184 : vector<16x256xf32>
    %186 = vector.broadcast %20 : vector<1x256xf32> to vector<16x256xf32>
    %187 = arith.mulf %183, %186 : vector<16x256xf32>
    %cst_94 = arith.constant 0.000000e+00 : f32
    %188 = vector.broadcast %cst_94 : f32 to vector<16x17xf32>
    %189 = vector.extract_strided_slice %185 {offsets = [0, 0], sizes = [16, 239], strides = [1, 1]} : vector<16x256xf32> to vector<16x239xf32>
    %190 = tpu.concatenate %188, %189 in 1 : vector<16x17xf32>, vector<16x239xf32> -> vector<16x256xf32>
    %191 = arith.truncf %190 : vector<16x256xf32> to vector<16x256xbf16>
    %c0_95 = arith.constant 0 : index
    %c0_96 = arith.constant 0 : index
    %192 = vector.load %arg14[%c0_95, %c0_96] : memref<144x256xbf16, #tpu.memory_space<vmem>>, vector<16x256xbf16>
    tpu.vector_store %arg14[%c0_95, %c0_96], %191 {strides = array<i32>} : memref<144x256xbf16, #tpu.memory_space<vmem>>, vector<16x256xbf16>,
    %cst_97 = arith.constant 0.000000e+00 : f32
    %193 = vector.broadcast %cst_97 : f32 to vector<16x16xf32>
    %194 = vector.extract_strided_slice %183 {offsets = [0, 0], sizes = [16, 240], strides = [1, 1]} : vector<16x256xf32> to vector<16x240xf32>
    %195 = tpu.concatenate %193, %194 in 1 : vector<16x16xf32>, vector<16x240xf32> -> vector<16x256xf32>
    %196 = arith.truncf %195 : vector<16x256xf32> to vector<16x256xbf16>
    %c16_98 = arith.constant 16 : index
    %c0_99 = arith.constant 0 : index
    %197 = vector.load %arg14[%c16_98, %c0_99] : memref<144x256xbf16, #tpu.memory_space<vmem>>, vector<16x256xbf16>
    tpu.vector_store %arg14[%c16_98, %c0_99], %196 {strides = array<i32>} : memref<144x256xbf16, #tpu.memory_space<vmem>>, vector<16x256xbf16>,
    %cst_100 = arith.constant 0.000000e+00 : f32
    %198 = vector.broadcast %cst_100 : f32 to vector<16x15xf32>
    %199 = vector.extract_strided_slice %187 {offsets = [0, 0], sizes = [16, 241], strides = [1, 1]} : vector<16x256xf32> to vector<16x241xf32>
    %200 = tpu.concatenate %198, %199 in 1 : vector<16x15xf32>, vector<16x241xf32> -> vector<16x256xf32>
    %201 = arith.truncf %200 : vector<16x256xf32> to vector<16x256xbf16>
    %c32_101 = arith.constant 32 : index
    %c0_102 = arith.constant 0 : index
    %202 = vector.load %arg14[%c32_101, %c0_102] : memref<144x256xbf16, #tpu.memory_space<vmem>>, vector<16x256xbf16>
    tpu.vector_store %arg14[%c32_101, %c0_102], %201 {strides = array<i32>} : memref<144x256xbf16, #tpu.memory_space<vmem>>, vector<16x256xbf16>,
    %cst_103 = arith.constant 0.000000e+00 : f32
    %203 = vector.broadcast %cst_103 : f32 to vector<16x1xf32>
    %204 = vector.extract_strided_slice %185 {offsets = [0, 0], sizes = [16, 255], strides = [1, 1]} : vector<16x256xf32> to vector<16x255xf32>
    %205 = tpu.concatenate %203, %204 in 1 : vector<16x1xf32>, vector<16x255xf32> -> vector<16x256xf32>
    %206 = arith.truncf %205 : vector<16x256xf32> to vector<16x256xbf16>
    %c48_104 = arith.constant 48 : index
    %c0_105 = arith.constant 0 : index
    %207 = vector.load %arg14[%c48_104, %c0_105] : memref<144x256xbf16, #tpu.memory_space<vmem>>, vector<16x256xbf16>
    tpu.vector_store %arg14[%c48_104, %c0_105], %206 {strides = array<i32>} : memref<144x256xbf16, #tpu.memory_space<vmem>>, vector<16x256xbf16>,
    %208 = arith.truncf %183 : vector<16x256xf32> to vector<16x256xbf16>
    %c64_106 = arith.constant 64 : index
    %c0_107 = arith.constant 0 : index
    %209 = vector.load %arg14[%c64_106, %c0_107] : memref<144x256xbf16, #tpu.memory_space<vmem>>, vector<16x256xbf16>
    tpu.vector_store %arg14[%c64_106, %c0_107], %208 {strides = array<i32>} : memref<144x256xbf16, #tpu.memory_space<vmem>>, vector<16x256xbf16>,
    %cst_108 = arith.constant 0.000000e+00 : f32
    %210 = vector.broadcast %cst_108 : f32 to vector<16x1xf32>
    %211 = vector.extract_strided_slice %187 {offsets = [0, 1], sizes = [16, 255], strides = [1, 1]} : vector<16x256xf32> to vector<16x255xf32>
    %212 = tpu.concatenate %211, %210 in 1 : vector<16x255xf32>, vector<16x1xf32> -> vector<16x256xf32>
    %213 = arith.truncf %212 : vector<16x256xf32> to vector<16x256xbf16>
    %c80_109 = arith.constant 80 : index
    %c0_110 = arith.constant 0 : index
    %214 = vector.load %arg14[%c80_109, %c0_110] : memref<144x256xbf16, #tpu.memory_space<vmem>>, vector<16x256xbf16>
    tpu.vector_store %arg14[%c80_109, %c0_110], %213 {strides = array<i32>} : memref<144x256xbf16, #tpu.memory_space<vmem>>, vector<16x256xbf16>,
    %cst_111 = arith.constant 0.000000e+00 : f32
    %215 = vector.broadcast %cst_111 : f32 to vector<16x15xf32>
    %216 = vector.extract_strided_slice %185 {offsets = [0, 15], sizes = [16, 241], strides = [1, 1]} : vector<16x256xf32> to vector<16x241xf32>
    %217 = tpu.concatenate %216, %215 in 1 : vector<16x241xf32>, vector<16x15xf32> -> vector<16x256xf32>
    %218 = arith.truncf %217 : vector<16x256xf32> to vector<16x256xbf16>
    %c96_112 = arith.constant 96 : index
    %c0_113 = arith.constant 0 : index
    %219 = vector.load %arg14[%c96_112, %c0_113] : memref<144x256xbf16, #tpu.memory_space<vmem>>, vector<16x256xbf16>
    tpu.vector_store %arg14[%c96_112, %c0_113], %218 {strides = array<i32>} : memref<144x256xbf16, #tpu.memory_space<vmem>>, vector<16x256xbf16>,
    %cst_114 = arith.constant 0.000000e+00 : f32
    %220 = vector.broadcast %cst_114 : f32 to vector<16x16xf32>
    %221 = vector.extract_strided_slice %183 {offsets = [0, 16], sizes = [16, 240], strides = [1, 1]} : vector<16x256xf32> to vector<16x240xf32>
    %222 = tpu.concatenate %221, %220 in 1 : vector<16x240xf32>, vector<16x16xf32> -> vector<16x256xf32>
    %223 = arith.truncf %222 : vector<16x256xf32> to vector<16x256xbf16>
    %c112_115 = arith.constant 112 : index
    %c0_116 = arith.constant 0 : index
    %224 = vector.load %arg14[%c112_115, %c0_116] : memref<144x256xbf16, #tpu.memory_space<vmem>>, vector<16x256xbf16>
    tpu.vector_store %arg14[%c112_115, %c0_116], %223 {strides = array<i32>} : memref<144x256xbf16, #tpu.memory_space<vmem>>, vector<16x256xbf16>,
    %cst_117 = arith.constant 0.000000e+00 : f32
    %225 = vector.broadcast %cst_117 : f32 to vector<16x17xf32>
    %226 = vector.extract_strided_slice %187 {offsets = [0, 17], sizes = [16, 239], strides = [1, 1]} : vector<16x256xf32> to vector<16x239xf32>
    %227 = tpu.concatenate %226, %225 in 1 : vector<16x239xf32>, vector<16x17xf32> -> vector<16x256xf32>
    %228 = arith.truncf %227 : vector<16x256xf32> to vector<16x256xbf16>
    %c128 = arith.constant 128 : index
    %c0_118 = arith.constant 0 : index
    %229 = vector.load %arg14[%c128, %c0_118] : memref<144x256xbf16, #tpu.memory_space<vmem>>, vector<16x256xbf16>
    tpu.vector_store %arg14[%c128, %c0_118], %228 {strides = array<i32>} : memref<144x256xbf16, #tpu.memory_space<vmem>>, vector<16x256xbf16>,
    %c0_119 = arith.constant 0 : index
    %c0_120 = arith.constant 0 : index
    %230 = vector.load %arg11[%c0_119, %c0_120] : memref<48x144xbf16, #tpu.memory_space<vmem>>, vector<48x144xbf16>
    %c0_121 = arith.constant 0 : index
    %c0_122 = arith.constant 0 : index
    %231 = vector.load %arg14[%c0_121, %c0_122] : memref<144x256xbf16, #tpu.memory_space<vmem>>, vector<144x256xbf16>
    %cst_123 = arith.constant dense<0.000000e+00> : vector<48x256xf32>
    %232 = tpu.matmul %230, %231, %cst_123 {dimension_numbers = #tpu.dot_dimension_numbers<[1], [0], [0], [1], [0, 0, 1, 1], [], []>} : vector<48x144xbf16>, vector<144x256xbf16>, vector<48x256xf32> -> vector<48x256xf32>
    %c0_124 = arith.constant 0 : index
    %c0_125 = arith.constant 0 : index
    %233 = vector.load %arg12[%c0_124, %c0_125] : memref<48x1xf32, #tpu.memory_space<vmem>>, vector<48x1xf32>
    %234 = vector.broadcast %233 : vector<48x1xf32> to vector<48x256xf32>
    %235 = arith.addf %232, %234 : vector<48x256xf32>
    %c0_126 = arith.constant 0 : index
    %c0_127 = arith.constant 0 : index
    %c0_128 = arith.constant 0 : index
    %236 = vector.load %arg13[%c0_126, %c0_127, %c0_128] : memref<1x48x256xf32, #tpu.memory_space<vmem>>, vector<1x48x256xf32>
    %237 = vector.shape_cast %236 : vector<1x48x256xf32> to vector<48x256xf32>
    %238 = vector.shape_cast %235 : vector<48x256xf32> to vector<1x48x256xf32>
    tpu.vector_store %arg13[%c0_126, %c0_127, %c0_128], %238 {strides = array<i32>} : memref<1x48x256xf32, #tpu.memory_space<vmem>>, vector<1x48x256xf32>,
    return
  }
  func.func @transform_0(%arg0: i32) -> (i32, i32, i32) {
    %c0_i32 = arith.constant 0 : i32
    %c0_i32_0 = arith.constant 0 : i32
    %c0_i32_1 = arith.constant 0 : i32
    return %arg0, %c0_i32, %c0_i32_0 : i32, i32, i32
  }
  func.func @transform_1(%arg0: i32) -> (i32, i32) {
    %c0_i32 = arith.constant 0 : i32
    %c0_i32_0 = arith.constant 0 : i32
    %c0_i32_1 = arith.constant 0 : i32
    return %c0_i32, %c0_i32_0 : i32, i32
  }
  func.func @transform_2(%arg0: i32) -> (i32, i32) {
    %c0_i32 = arith.constant 0 : i32
    %c0_i32_0 = arith.constant 0 : i32
    %c0_i32_1 = arith.constant 0 : i32
    return %c0_i32, %c0_i32_0 : i32, i32
  }
  func.func @transform_3(%arg0: i32) -> (i32, i32) {
    %c0_i32 = arith.constant 0 : i32
    %c0_i32_0 = arith.constant 0 : i32
    %c0_i32_1 = arith.constant 0 : i32
    return %c0_i32, %c0_i32_0 : i32, i32
  }
  func.func @transform_4(%arg0: i32) -> (i32, i32) {
    %c0_i32 = arith.constant 0 : i32
    %c0_i32_0 = arith.constant 0 : i32
    %c0_i32_1 = arith.constant 0 : i32
    return %c0_i32, %c0_i32_0 : i32, i32
  }
  func.func @transform_5(%arg0: i32) -> (i32, i32) {
    %c0_i32 = arith.constant 0 : i32
    %c0_i32_0 = arith.constant 0 : i32
    %c0_i32_1 = arith.constant 0 : i32
    return %c0_i32, %c0_i32_0 : i32, i32
  }
  func.func @transform_6(%arg0: i32) -> (i32, i32) {
    %c0_i32 = arith.constant 0 : i32
    %c0_i32_0 = arith.constant 0 : i32
    %c0_i32_1 = arith.constant 0 : i32
    return %c0_i32, %c0_i32_0 : i32, i32
  }
  func.func @transform_7(%arg0: i32) -> (i32, i32, i32) {
    %c0_i32 = arith.constant 0 : i32
    %c0_i32_0 = arith.constant 0 : i32
    %c0_i32_1 = arith.constant 0 : i32
    %c0_i32_2 = arith.constant 0 : i32
    return %c0_i32, %c0_i32_0, %c0_i32_1 : i32, i32, i32
  }
  func.func @transform_8(%arg0: i32) -> (i32, i32, i32) {
    %c0_i32 = arith.constant 0 : i32
    %c0_i32_0 = arith.constant 0 : i32
    %c0_i32_1 = arith.constant 0 : i32
    %c0_i32_2 = arith.constant 0 : i32
    return %c0_i32, %c0_i32_0, %c0_i32_1 : i32, i32, i32
  }
  func.func @transform_9(%arg0: i32) -> (i32, i32, i32) {
    %c0_i32 = arith.constant 0 : i32
    %c0_i32_0 = arith.constant 0 : i32
    %c0_i32_1 = arith.constant 0 : i32
    %c0_i32_2 = arith.constant 0 : i32
    return %c0_i32, %c0_i32_0, %c0_i32_1 : i32, i32, i32
  }
  func.func @transform_10(%arg0: i32) -> (i32, i32) {
    %c0_i32 = arith.constant 0 : i32
    %c0_i32_0 = arith.constant 0 : i32
    %c0_i32_1 = arith.constant 0 : i32
    return %c0_i32, %c0_i32_0 : i32, i32
  }
  func.func @transform_11(%arg0: i32) -> (i32, i32) {
    %c0_i32 = arith.constant 0 : i32
    %c0_i32_0 = arith.constant 0 : i32
    %c0_i32_1 = arith.constant 0 : i32
    return %c0_i32, %c0_i32_0 : i32, i32
  }
  func.func @transform_12(%arg0: i32) -> (i32, i32, i32) {
    %c0_i32 = arith.constant 0 : i32
    %c0_i32_0 = arith.constant 0 : i32
    %c0_i32_1 = arith.constant 0 : i32
    return %arg0, %c0_i32, %c0_i32_0 : i32, i32, i32
  }
}

</mosaic_0001>

<bundles_post_ra>
// kernel: ifblock_forward.1
= control target key start
LH: loop header
LB: loop body
LE: loop exit
PB: predicated region body
PF: predicated region fallthrough
CT: control target
= control target key end

     0   :  { %s2418_s21 = smov 0   ;;  %s3059_s0 = inlined_call_operand.vmem [shape: f32[2,128,256], index: 0, kind: input, shape index: {}]   ;;  %s3060_s1 = inlined_call_operand.vmem [shape: bf16[8,72], index: 1, kind: input, shape index: {}]   ;;  %s3061_s2 = inlined_call_operand.vmem [shape: f32[8,1], index: 2, kind: input, shape index: {}]   ;;  %s3062_s3 = inlined_call_operand.vmem [shape: f32[8,1], index: 3, kind: input, shape index: {}]   ;;  %s3063_s4 = inlined_call_operand.vmem [shape: bf16[16,72], index: 4, kind: input, shape index: {}]   ;;  %s3064_s5 = inlined_call_operand.vmem [shape: f32[16,1], index: 5, kind: input, shape index: {}]   ;;  %s3065_s6 = inlined_call_operand.vmem [shape: f32[16,1], index: 6, kind: input, shape index: {}]   ;;  %s3066_s7 = inlined_call_operand.vmem [shape: bf16[6,16,144], index: 7, kind: input, shape index: {}]   ;;  %s3067_s8 = inlined_call_operand.vmem [shape: f32[6,16,1], index: 8, kind: input, shape index: {}]   ;;  %s3068_s9 = inlined_call_operand.vmem [shape: f32[6,16,1], index: 9, kind: input, shape index: {}]   ;;  %s3069_s10 = inlined_call_operand.vmem [shape: bf16[48,144], index: 10, kind: input, shape index: {}]   ;;  %s3070_s11 = inlined_call_operand.vmem [shape: f32[48,1], index: 11, kind: input, shape index: {}]   ;;  %s3071_s12 = inlined_call_operand.vmem [shape: f32[2,48,256], index: 12, kind: output, shape index: {}]  }
   0x1 LB: > { %s1762_s22 = sadd.s32 4294967295, %s2311_s21   ;;  %p1766_p0 = scmp.ge.s32.totalorder %s2311_s21, 1  ;;  %s2311_s21 = sphi %s2418_s21, %s22_s21  }
   0x2   : > { %p362_p1 = scmp.lt.s32.totalorder %s2311_s21, 3 }
   0x4   : > { %p363_p2 = pnand %p1766_p0, %p362_p1 }
   0x5   : > { %p404_p3 = scmp.lt.s32.totalorder (!%p363_p2), %s1762_s22, 1  ;;  %v415_v0 = vlaneseq (!%p363_p2)  ;;  %v2333_v12 = vmov (!%p363_p2), 0.0   ;;  %s2334_s13 = smov (!%p363_p2), 16   ;;  %v2337_v45 = vmov (!%p363_p2), 0   ;;  %v558_v55 = vld [vmem:[%s3061_s2] sm:$0xff] (!%p363_p2)  ;;  %vm511_vm4 = vcmask (!%p363_p2), 130048  }
   0x6   : > { %366 = sbr.rel (%p363_p2) target bundleno = 1542 (0x606), region = 68  ;;  %s2335_s14 = smov (!%p363_p2), 17   ;;  %696 = vmatprep.mubr.bf16.mxu1 (!%p363_p2), %v2337_v45  ;;  %607 = vmatprep.mubr.bf16.mxu0 (!%p363_p2), %v2337_v45  ;;  %v618_v56 = vld [vmem:[%s3062_s3] sm:$0xff] (!%p363_p2)  ;;  %vm2564_vm5 = vmneg (!%p363_p2), %vm511_vm4  ;;  %vm500_vm6 = vcmask (!%p363_p2), 138240   ;;  %vm3076_vm9 = vcmask (!%p363_p2), 7168   ;;  %vm2338_vm12 = vmmov (!%p363_p2), 1  }
   0x7   : > { %v416_v1 = vand.u32 (!%p363_p2), 127, %v415_v0  ;;  %s2336_s15 = smov (!%p363_p2), 1   ;;  %1985 = vset.pattern.permute.xlu1 (!%p363_p2), %v2337_v45  ;;  %1986 = vset.pattern.permute.xlu0 (!%p363_p2), %v2337_v45  ;;  %vm2572_vm7 = vmneg (!%p363_p2), %vm500_vm6  ;;  %vm568_vm15 = vcmask (!%p363_p2), 1043456   ;;  %s2781_s19 = smov (!%p363_p2), 0  }
   0x8   : > { %vm2579_vm8 = vmpackc.low (!%p363_p2), %vm2564_vm5, %vm2564_vm5 }
   0x9   : > { %v417_v2 = vadd.s32 (!%p363_p2), 128, %v416_v1  ;;  %v422_v3 = vand.u32 (!%p363_p2), 15, %v416_v1  ;;  %vm1776_vm10 = vmpackc.low (!%p363_p2), %vm2564_vm5, %vm2572_vm7 }
   0xa   : > { %vm2594_vm11 = vmneg (!%p363_p2), %vm3076_vm9 }
   0xb   : > { %v429_v7 = vand.u32 (!%p363_p2), 15, %v417_v2  ;;  %vm442_vm0 = vcmp.ne.s32.totalorder (!%p363_p2), %v422_v3, 0  ;;  %vm448_vm1 = vcmp.ne.s32.totalorder (!%p363_p2), %v422_v3, 15  ;;  %vm1796_vm13 = vmpackc.low (!%p363_p2), %vm2338_vm12, %vm2564_vm5 }
   0xc   : > { %v2456_v13 = vsel (!%p363_p2), %vm442_vm0, 1.0, %v2333_v12  ;;  %v2458_v14 = vsel (!%p363_p2), %vm448_vm1, 1.0, %v2333_v12  ;;  %vm1781_vm14 = vmpackc.low (!%p363_p2), %vm2594_vm11, %vm2564_vm5  ;;  %vm564_vm1 = vcmask (!%p363_p2), 588800  }
   0xd   : > { %s3121_s22 = smov (!%p404_p3, %s1762_s22), 1  ;;  %vm443_vm2 = vcmp.ne.s32.totalorder %v429_v7, 0  ;;  %vm449_vm3 = vcmp.ne.s32.totalorder %v429_v7, 15  ;;  %vm2638_vm0 = vmpackc.low %vm2338_vm12, %vm2594_vm11 }
   0xe   : > { %s1851_s23 = sshll.u32 %s3121_s22, 8  ;;  %s1871_s24 = smul.u32 96, %s3121_s22  ;;  %v2476_v21 = vsel %vm443_vm2, 1.0, %v2333_v12  ;;  %v2484_v24 = vsel %vm449_vm3, 1.0, %v2333_v12  ;;  %vm1806_vm2 = vmpackc.low %vm2594_vm11, %vm2338_vm12 }
   0xf   : > { %s2429_s27 = scalar_lea.vmem %s3059_s0, %s1851_s23 }
  0x10   : > { %s2434_s30 = scalar_lea.vmem %s3071_s12, %s1871_s24  ;;  %v2437_v4 = vld [vmem:[%s2429_s27 + $0xd0] sm:$0xff]  ;;  %v2440_v5 = vld [vmem:[%s2429_s27 + $0xd8] sm:$0xff]  ;;  %v2443_v6 = vld [vmem:[%s2429_s27 + $0xc0] sm:$0xff] }
  0x11   : > { %v1940_v8 = vpack.i.bf16 %v2440_v5, %v2437_v4  ;;  %v2448_v9 = vld [vmem:[%s2429_s27 + $0xc8] sm:$0xff]  ;;  %v2451_v10 = vld [vmem:[%s2429_s27 + $0xe0] sm:$0xff]  ;;  %v2465_v17 = vld [vmem:[%s2429_s27 + $0xf0] sm:$0xff] }
  0x12   : > { %v2454_v11 = vld [vmem:[%s2429_s27 + $0xe8] sm:$0xff]  ;;  %v1950_v15 = vpack.i.bf16 %v2448_v9, %v2443_v6  ;;  %v794_v16 = vpack.c.bf16 %v2451_v10, %v2437_v4  ;;  %v2468_v18 = vld [vmem:[%s2429_s27 + $0xf8] sm:$0xff]  ;;  %v2471_v19 = vld [vmem:[%s2429_s27 + $0x30] sm:$0xff]  ;;  %v492_v22 = vmul.f32 %v2458_v14, %v2465_v17 }
  0x13   : > { %1941 = vrot.lane.b32.xlu0 %v1940_v8, %s2334_s13  ;;  %v1945_v20 = vpack.i.bf16 %v2454_v11, %v2451_v10  ;;  %v2481_v23 = vld [vmem:[%s2429_s27 + $0x38] sm:$0xff]  ;;  %v2487_v25 = vld [vmem:[%s2429_s27 + $0x70] sm:$0xff]  ;;  %v493_v27 = vmul.f32 %v2484_v24, %v2468_v18  ;;  %v486_v28 = vmul.f32 %v2458_v14, %v2471_v19  ;;  %v2499_v30 = vld [vmem:[%s2429_s27 + $0x28] sm:$0xff]  ;;  %v1955_v35 = vpack.i.bf16 %v2468_v18, %v2465_v17 }
  0x14   : > { %1951 = vrot.lane.b32.xlu1 %v1950_v15, %s2334_s13  ;;  %v2490_v26 = vld [vmem:[%s2429_s27 + $0x78] sm:$0xff]  ;;  %v487_v29 = vmul.f32 %v2484_v24, %v2481_v23  ;;  %v2502_v31 = vld [vmem:[%s2429_s27 + $0xb0] sm:$0xff]  ;;  %v653_v33 = vpack.c.bf16 %v2481_v23, %v2499_v30  ;;  %v488_v36 = vmul.f32 %v2458_v14, %v2487_v25  ;;  %v2517_v38 = vld [vmem:[%s2429_s27 + $0x20] sm:$0xff]  ;;  %v795_v54 = vpack.c.bf16 %v2454_v11, %v2440_v5 }
  0x15   : > { %v2505_v32 = vld [vmem:[%s2429_s27 + $0xb8] sm:$0xff]  ;;  %v1960_v34 = vpack.i.bf16 %v493_v27, %v492_v22  ;;  %v489_v37 = vmul.f32 %v2484_v24, %v2490_v26  ;;  %v652_v39 = vpack.c.bf16 %v2471_v19, %v2517_v38  ;;  %v490_v41 = vmul.f32 %v2458_v14, %v2502_v31  ;;  %v2541_v48 = vld [vmem:[%s2429_s27 + $0x90] sm:$0xff]  ;;  %v2546_v50 = vld [vmem:[%s2429_s27 + $0xa8] sm:$0xff] }
  0x16   : > { %v1965_v40 = vpack.i.bf16 %v487_v29, %v486_v28  ;;  %v491_v42 = vmul.f32 %v2484_v24, %v2505_v32  ;;  %v2535_v46 = vld [vmem:[%s2429_s27 + $0x98] sm:$0xff]  ;;  %v790_v49 = vpack.c.bf16 %v2541_v48, %v2487_v25  ;;  %v793_v51 = vpack.c.bf16 %v2505_v32, %v2546_v50  ;;  %v2551_v52 = vld [vmem:[%s2429_s27 + $0xa0] sm:$0xff] }
  0x17   : > { %1946 = vrot.lane.b32.xlu0 %v1945_v20, %s2334_s13  ;;  %v1970_v43 = vpack.i.bf16 %v489_v37, %v488_v36  ;;  %v791_v47 = vpack.c.bf16 %v2535_v46, %v2490_v26  ;;  %v792_v53 = vpack.c.bf16 %v2502_v31, %v2551_v52  ;;  %v657_v23 = vpack.c.bf16 %v2490_v26, %v2490_v26 }
  0x18   : > { %1961 = vrot.lane.b32.xlu1 %v1960_v34, %s2335_s14  ;;  %v1975_v44 = vpack.i.bf16 %v491_v42, %v490_v41  ;;  %v457_v41 = vld [vmem:[%s2429_s27 + $0x18] sm:$0xff]  ;;  %v456_v42 = vld [vmem:[%s2429_s27 + $0x10] sm:$0xff]  ;;  %v656_v30 = vpack.c.bf16 %v2487_v25, %v2487_v25  ;;  %v797_v25 = vpack.c.bf16 %v2468_v18, %v2468_v18  ;;  %v796_v32 = vpack.c.bf16 %v2465_v17, %v2465_v17 }
  0x19   : > { %v735_v31 = vpack.c.bf16 %v2437_v4, %v2437_v4 }
  0x1a   : > { %v799_v11 = vsel %vm568_vm15, %v796_v32, 0 }
  0x1b   : > { %1956 = vrot.lane.b32.xlu0 %v1955_v35, %s2334_s13 }
  0x1c   : > { %1966 = vrot.lane.b32.xlu1 %v1965_v40, %s2336_s15 }
  0x1f   : > { %1971 = vrot.lane.b32.xlu0 %v1970_v43, %s2336_s15 }
  0x20   : > { %1976 = vrot.lane.b32.xlu1 %v1975_v44, %s2336_s15 }
  0x23   : > { %1981 = vrot.lane.b32.xlu0 %v1960_v34, %s2336_s15 }
  0x24   : > { %561 = vperm.xlu1 %1985, %v558_v55  }
  0x27   : > { %621 = vperm.xlu0 %1986, %v618_v56  }
  0x85   : > { %v1942_v57 = vpop.permute.xlu0 %1941 }
  0x86   : > { %v1952_v58 = vpop.permute.xlu1 %1951  ;;  %v1944_v59 = vunpack.i.h.bf16 %v1942_v57  ;;  %v1943_v60 = vunpack.i.l.bf16 %v1942_v57 }
  0x87   : > { %v1954_v61 = vunpack.i.h.bf16 %v1952_v58  ;;  %v1953_v62 = vunpack.i.l.bf16 %v1952_v58 }
  0x88   : > { %v522_v7 = vsel %vm511_vm4, %v1943_v60, %v1944_v59  ;;  %v455_v59 = vld [vmem:[%s2429_s27 + $0x8] sm:$0xff] }
  0x89   : > { %v1947_v63 = vpop.permute.xlu0 %1946  ;;  %v512_v20 = vsel %vm511_vm4, %v1953_v62, %v1954_v61 }
  0x8a   : > { %v1949_v0 = vunpack.i.h.bf16 %v1947_v63  ;;  %v1948_v1 = vunpack.i.l.bf16 %v1947_v63  ;;  %v1962_v3 = vpop.permute.xlu1 %1961 }
  0x8b   : > { %v1964_v8 = vunpack.i.h.bf16 %v1962_v3  ;;  %v1963_v12 = vunpack.i.l.bf16 %v1962_v3 }
  0x8c   : > { %v634_v15 = vsel %vm511_vm4, %v1948_v1, %v1949_v0  ;;  %v1793_v27 = vpack.c.bf16 %v1948_v1, %v1943_v60 }
  0x8d   : > { %v1957_v28 = vpop.permute.xlu0 %1956  ;;  %v649_v29 = vpack.c.bf16 %v634_v15, %v522_v7  ;;  %v1777_v35 = vpack.c.bf16 %v1953_v62, %v1963_v12  ;;  %v501_v40 = vsel %vm500_vm6, %v1963_v12, %v1964_v8  ;;  %v465_v8 = vld [vmem:[%s2429_s27 + $0x58] sm:$0xff]  ;;  %v467_v12 = vld [vmem:[%s2429_s27 + $0x68] sm:$0xff] }
  0x8e   : > { %v1959_v36 = vunpack.i.h.bf16 %v1957_v28  ;;  %v1958_v37 = vunpack.i.l.bf16 %v1957_v28  ;;  %v1967_v43 = vpop.permute.xlu1 %1966  ;;  %v548_v44 = vpack.c.bf16 %v512_v20, %v501_v40  ;;  %v552_v20 = vpack.c.bf16 %v457_v41, %v455_v59  ;;  %v557_v59 = vld [vmem:[%s3060_s1] sm:$0xf] }
  0x8f   : > { %664 = vmatprep.subr.bf16.mxu1 %v649_v29  ;;  %v1969_v55 = vunpack.i.h.bf16 %v1967_v43  ;;  %v1968_v56 = vunpack.i.l.bf16 %v1967_v43  ;;  %v463_v29 = vld [vmem:[%s2429_s27 + $0x48] sm:$0xff]  ;;  %v556_v19 = vpack.c.bf16 %v465_v8, %v465_v8 }
  0x90   : > { %1794 = vmatpush1.bf16.msk.msra.mxu1 %vm2579_vm8, %v1793_v27  ;;  %v644_v57 = vsel %vm511_vm4, %v1958_v37, %v1959_v36  ;;  %575 = vmatprep.subr.bf16.mxu0 %v548_v44  ;;  %v1797_v63 = vpack.c.bf16 %v456_v42, %v1958_v37  ;;  %v454_v27 = vld [vmem:[%s2429_s27] sm:$0xff]  ;;  %v464_v36 = vld [vmem:[%s2429_s27 + $0x50] sm:$0xff] }
  0x91   : > { %v651_v61 = vpack.c.bf16 %v457_v41, %v644_v57  ;;  %v1972_v62 = vpop.permute.xlu0 %1971  ;;  %v533_v0 = vsel %vm3076_vm9, %v1968_v56, %v1969_v55  ;;  %1778 = vmatpush1.bf16.msk.msra.mxu0 %vm1776_vm10, %v1777_v35  ;;  %v1782_v28 = vpack.c.bf16 %v1968_v56, %v1943_v60  ;;  %v466_v37 = vld [vmem:[%s2429_s27 + $0x60] sm:$0xff]  ;;  %v551_v40 = vpack.c.bf16 %v456_v42, %v454_v27 }
  0x92   : > { %v1974_v1 = vunpack.i.h.bf16 %v1972_v62  ;;  %v1973_v3 = vunpack.i.l.bf16 %v1972_v62  ;;  %v550_v15 = vpack.c.bf16 %v533_v0, %v522_v7  ;;  %v655_v7 = vpack.c.bf16 %v467_v12, %v465_v8  ;;  %v462_v60 = vld [vmem:[%s2429_s27 + $0x40] sm:$0xff] }
  0x93   : > { %666 = vmatprep.subr.bf16.mxu1 %v651_v61  ;;  %v654_v43 = vpack.c.bf16 %v466_v37, %v464_v36  ;;  %v555_v38 = vpack.c.bf16 %v464_v36, %v464_v36  ;;  %v659_v56 = vsel %vm568_vm15, %v656_v30, 0 }
  0x94   : > { %1798 = vmatpush1.bf16.msk.msra.mxu1 %vm1796_vm13, %v1797_v63  ;;  %v543_v35 = vsel %vm3076_vm9, %v1973_v3, %v1974_v1  ;;  %577 = vmatprep.subr.bf16.mxu0 %v550_v15  ;;  %v1786_v44 = vpack.c.bf16 %v462_v60, %v1973_v3  ;;  %v471_v3 = vld [vmem:[%s2429_s27 + $0x88] sm:$0xff]  ;;  %v470_v15 = vld [vmem:[%s2429_s27 + $0x80] sm:$0xff] }
  0x95   : > { %668 = vmatprep.subr.bf16.mxu1 %v653_v33  ;;  %1783 = vmatpush1.bf16.msk.msra.mxu0 %vm1781_vm14, %v1782_v28  ;;  %v554_v41 = vpack.c.bf16 %v463_v29, %v543_v35  ;;  %v1977_v33 = vpop.permute.xlu1 %1976  ;;  %v570_v57 = vsel %vm568_vm15, %v555_v38, 0  ;;  %v1982_v62 = vpop.permute.xlu0 %1981 }
  0x96   : > { %579 = vmatprep.subr.bf16.mxu0 %v552_v20  ;;  %v1978_v55 = vunpack.i.l.bf16 %v1977_v33  ;;  %v1984_v0 = vunpack.i.h.bf16 %v1982_v62  ;;  %v1983_v1 = vunpack.i.l.bf16 %v1982_v62 }
  0x98   : > { %669 = vmatpush1.bf16.msra.mxu1 %v652_v39  ;;  %v1979_v39 = vunpack.i.h.bf16 %v1977_v33  ;;  %v1807_v12 = vpack.c.bf16 %v1978_v55, %v464_v36  ;;  %v725_v26 = vsel %vm3076_vm9, %v1983_v1, %v1984_v0 }
  0x99   : > { %670 = vmatprep.subr.bf16.mxu1 %v655_v7  ;;  %580 = vmatpush1.bf16.msra.mxu0 %v551_v40  ;;  %v734_v20 = vpack.c.bf16 %v2448_v9, %v725_v26  ;;  %v736_v9 = vpack.c.bf16 %v2440_v5, %v2440_v5 }
  0x9a   : > { %581 = vmatprep.subr.bf16.mxu0 %v554_v41  ;;  %v717_v61 = vsel %vm3076_vm9, %v1978_v55, %v1979_v39 }
  0x9b   : > { %v730_v63 = vpack.c.bf16 %v717_v61, %v465_v8  ;;  %v732_v8 = vpack.c.bf16 %v2535_v46, %v471_v3  ;;  %v1811_v46 = vpack.c.bf16 %v2443_v6, %v1983_v1  ;;  %v738_v6 = vsel %vm568_vm15, %v735_v31, 0 }
  0x9c   : > { %671 = vmatpush1.bf16.msra.mxu1 %v654_v43 }
  0x9d   : > { %1799 = vmatprep.subr.msk.bf16.mxu1 %vm568_vm15, %v657_v23  ;;  %1787 = vmatpush1.bf16.msk.msra.mxu0 %vm2638_vm0, %v1786_v44 }
  0x9e   : > { %1788 = vmatprep.subr.msk.bf16.mxu0 %vm568_vm15, %v556_v19 }
  0xa0   : > { %673 = vmatpush1.bf16.msra.mxu1 %v659_v56 }
  0xa1   : > { %804 = vmatprep.subr.bf16.mxu1 %v655_v7  ;;  %584 = vmatpush1.bf16.msra.mxu0 %v570_v57 }
  0xa2   : > { %743 = vmatprep.subr.bf16.mxu0 %v554_v41 }
  0xa3   : > { %1800 = vmatmul.mubr.msk.bf16.vlgmr.msra.gmra.mrb[0].mxu1 %vm564_vm1, %v557_v59  ;;  %v562_v4 = vpop.permute.xlu1 %561 }
  0xa4   : > { %805 = vmatpush1.bf16.msra.mxu1 %v654_v43  ;;  %836 = vmatprep.mubr.bf16.mxu1 %v2337_v45 }
  0xa5   : > { %1789 = vmatmul.mubr.msk.bf16.vlgmr.msra.gmra.mrb[0].mxu0 %vm564_vm1, %v557_v59  ;;  %806 = vmatprep.subr.bf16.mxu1 %v791_v47  ;;  %v731_v47 = vpack.c.bf16 %v2541_v48, %v470_v15 }
  0xa6   : > { %1804 = vmatpush1.bf16.msk.msra.mxu0 %vm2638_vm0, %v1786_v44  ;;  %775 = vmatprep.mubr.bf16.mxu0 %v2337_v45  ;;  %v622_v10 = vpop.permute.xlu0 %621 }
  0xa7   : > { %745 = vmatprep.subr.bf16.mxu0 %v730_v63 }
  0xa8   : > { %807 = vmatpush1.bf16.msra.mxu1 %v790_v49 }
  0xa9   : > { %808 = vmatprep.subr.bf16.mxu1 %v793_v51 }
  0xaa   : > { %1808 = vmatpush1.bf16.msk.msra.mxu0 %vm1806_vm2, %v1807_v12 }
  0xab   : > { %747 = vmatprep.subr.bf16.mxu0 %v732_v8 }
  0xac   : > { %809 = vmatpush1.bf16.msra.mxu1 %v792_v53 }
  0xad   : > { %810 = vmatprep.subr.bf16.mxu1 %v795_v54 }
  0xae   : > { %748 = vmatpush1.bf16.msra.mxu0 %v731_v47 }
  0xaf   : > { %749 = vmatprep.subr.bf16.mxu0 %v734_v20 }
  0xb0   : > { %811 = vmatpush1.bf16.msra.mxu1 %v794_v16 }
  0xb1   : > { %1815 = vmatprep.subr.msk.bf16.mxu1 %vm568_vm15, %v797_v25 }
  0xb2   : > { %1812 = vmatpush1.bf16.msk.msra.mxu0 %vm2638_vm0, %v1811_v46 }
  0xb3   : > { %1813 = vmatprep.subr.msk.bf16.mxu0 %vm568_vm15, %v736_v9 }
  0xb4   : > { %813 = vmatpush1.bf16.msra.mxu1 %v799_v11  ;;  %v916_v11 = vld [vmem:[%s3064_s5 + $0x8] sm:$0xff] }
  0xb6   : > { %752 = vmatpush1.bf16.msra.mxu0 %v738_v6  ;;  %v989_v6 = vld [vmem:[%s3065_s6 + $0x8] sm:$0xff] }
  0xb7   : > { %1816 = vmatmul.mubr.msk.bf16.vlgmr.msra.gmra.mrb[4].mxu1 %vm564_vm1, %v557_v59 }
  0xb9   : > { %1814 = vmatmul.mubr.msk.bf16.vlgmr.msra.gmra.mrb[4].mxu0 %vm564_vm1, %v557_v59 }
  0xba   : > { %973 = vmatprep.mubr.bf16.mxu0 %v2337_v45 }
 0x176   : > { %v698_v5 = vpop.f32.mrb[0].mxu1 }
 0x177   : > { %v699_v16 = vadd.f32 %v698_v5, %v562_v4  ;;  %v700_v17 = vpop.f32.mrb[1].mxu1  ;;  %v988_v5 = vld [vmem:[%s3065_s6] sm:$0xff] }
 0x178   : > { %v609_v18 = vpop.f32.mrb[0].mxu0  ;;  %v701_v48 = vadd.f32 %v700_v17, %v562_v4  ;;  %v702_v49 = vpop.f32.mrb[2].mxu1 }
 0x179   : > { %vm705_vm3 = vcmp.ge.f32.partialorder %v699_v16, 0.0  ;;  %v610_v50 = vadd.f32 %v609_v18, %v562_v4  ;;  %v611_v51 = vpop.f32.mrb[1].mxu0  ;;  %v703_v52 = vpop.f32.mrb[3].mxu1  ;;  %v707_v53 = vmul.f32 %v699_v16, %v622_v10 }
 0x17a   : > { %vm706_vm12 = vcmp.ge.f32.partialorder %v701_v48, 0.0  ;;  %v612_v54 = vadd.f32 %v611_v51, %v562_v4  ;;  %v613_v27 = vpop.f32.mrb[2].mxu0  ;;  %v708_v28 = vmul.f32 %v701_v48, %v622_v10 }
 0x17b   : > { %vm616_vm13 = vcmp.ge.f32.partialorder %v610_v50, 0.0  ;;  %v614_v29 = vpop.f32.mrb[3].mxu0  ;;  %v2703_v35 = vsel %vm705_vm3, %v699_v16, %v707_v53  ;;  %v624_v7 = vmul.f32 %v622_v10, %v610_v50 }
 0x17c   : > { %vm617_vm2 = vcmp.ge.f32.partialorder %v612_v54, 0.0  ;;  %v625_v36 = vmul.f32 %v622_v10, %v612_v54  ;;  %v2705_v37 = vsel %vm706_vm12, %v701_v48, %v708_v28  ;;  %v851_v40 = vmul.f32 %v2458_v14, %v2703_v35 }
 0x17d   : > { %v852_v60 = vmul.f32 %v2484_v24, %v2705_v37  ;;  %v2711_v41 = vsel %vm616_vm13, %v610_v50, %v624_v7 }
 0x17e   : > { %v2713_v43 = vsel %vm617_vm2, %v612_v54, %v625_v36  ;;  %v907_v23 = vpack.c.bf16 %v2703_v35, %v2711_v41 }
 0x17f   : > { %v2002_v30 = vpack.i.bf16 %v852_v60, %v851_v40  ;;  %v908_v33 = vpack.c.bf16 %v2705_v37, %v2713_v43  ;;  %v2012_v37 = vld [vmem:[%s3063_s4] sm:$0xff]  }
 0x18a   : > { %v838_v44 = vpop.f32.mrb[4].mxu1 }
 0x18b   : > { %v839_v19 = vadd.f32 %v838_v44, %v562_v4  ;;  %v840_v38 = vpop.f32.mrb[5].mxu1 }
 0x18c   : > { %v777_v39 = vpop.f32.mrb[4].mxu0  ;;  %v841_v55 = vadd.f32 %v840_v38, %v562_v4  ;;  %v842_v56 = vpop.f32.mrb[6].mxu1 }
 0x18d   : > { %vm845_vm3 = vcmp.ge.f32.partialorder %v839_v19, 0.0  ;;  %v847_v57 = vmul.f32 %v839_v19, %v622_v10  ;;  %v778_v59 = vadd.f32 %v777_v39, %v562_v4  ;;  %v779_v61 = vpop.f32.mrb[5].mxu0  ;;  %v843_v62 = vpop.f32.mrb[7].mxu1 }
 0x18e   : > { %vm846_vm12 = vcmp.ge.f32.partialorder %v841_v55, 0.0  ;;  %v848_v63 = vmul.f32 %v841_v55, %v622_v10  ;;  %v780_v0 = vadd.f32 %v779_v61, %v562_v4  ;;  %v781_v1 = vpop.f32.mrb[6].mxu0  ;;  %v915_v4 = vld [vmem:[%s3064_s5] sm:$0xff] }
 0x18f   : > { %v2719_v3 = vsel %vm845_vm3, %v839_v19, %v847_v57  ;;  %v782_v12 = vpop.f32.mrb[7].mxu0  ;;  %v786_v8 = vmul.f32 %v778_v59, %v622_v10  ;;  %vm784_vm13 = vcmp.ge.f32.partialorder %v778_v59, 0.0 }
 0x190   : > { %v850_v15 = vsel %vm846_vm12, %v841_v55, %v848_v63  ;;  %v787_v26 = vmul.f32 %v780_v0, %v622_v10  ;;  %v853_v47 = vmul.f32 %v2458_v14, %v2719_v3  ;;  %vm785_vm2 = vcmp.ge.f32.partialorder %v780_v0, 0.0 }
 0x191   : > { %v1987_v20 = vpack.i.bf16 %v850_v15, %v2719_v3  ;;  %v854_v25 = vmul.f32 %v2484_v24, %v850_v15  ;;  %v788_v46 = vsel %vm784_vm13, %v778_v59, %v786_v8  ;;  %v912_v59 = vpack.c.bf16 %v850_v15, %v850_v15 }
 0x192   : > { %v789_v9 = vsel %vm785_vm2, %v780_v0, %v787_v26  ;;  %v911_v61 = vpack.c.bf16 %v2719_v3, %v2719_v3 }
 0x193   : > { %1988 = vrot.lane.b32.xlu0 %v1987_v20, %s2334_s13  ;;  %v1992_v32 = vpack.i.bf16 %v854_v25, %v853_v47  ;;  %v1997_v31 = vpack.i.bf16 %v789_v9, %v788_v46 }
 0x194   : > { %v936_v2 = vsel %vm568_vm15, %v911_v61, 0 }
 0x195   : > { %1993 = vrot.lane.b32.xlu1 %v1992_v32, %s2335_s14 }
 0x197   : > { %2008 = vrot.lane.b32.xlu0 %v1992_v32, %s2336_s15 }
 0x199   : > { %1998 = vrot.lane.b32.xlu1 %v1997_v31, %s2334_s13 }
 0x19b   : > { %924 = vperm.xlu0 %1986, %v916_v11  }
 0x19d   : > { %2003 = vrot.lane.b32.xlu1 %v2002_v30, %s2336_s15 }
 0x19f   : > { %997 = vperm.xlu0 %1986, %v989_v6  }
 0x1a1   : > { %919 = vperm.xlu1 %1985, %v915_v4  }
 0x1a5   : > { %992 = vperm.xlu1 %1985, %v988_v5  }
 0x205   : > { %v1989_v16 = vpop.permute.xlu0 %1988 }
 0x206   : > { %v1991_v51 = vunpack.i.h.bf16 %v1989_v16  ;;  %v1990_v52 = vunpack.i.l.bf16 %v1989_v16 }
 0x207   : > { %v1994_v10 = vpop.permute.xlu1 %1993 }
 0x208   : > { %v1996_v17 = vunpack.i.h.bf16 %v1994_v10  ;;  %v1995_v18 = vunpack.i.l.bf16 %v1994_v10  ;;  %v881_v44 = vsel %vm511_vm4, %v1990_v52, %v1991_v51 }
 0x209   : > { %v2009_v27 = vpop.permute.xlu0 %2008 }
 0x20a   : > { %v861_v53 = vsel %vm500_vm6, %v1995_v18, %v1996_v17  ;;  %v2011_v60 = vunpack.i.h.bf16 %v2009_v27  ;;  %v2010_v30 = vunpack.i.l.bf16 %v2009_v27 }
 0x20b   : > { %v1999_v48 = vpop.permute.xlu1 %1998 }
 0x20c   : > { %v2001_v49 = vunpack.i.h.bf16 %v1999_v48  ;;  %v2000_v50 = vunpack.i.l.bf16 %v1999_v48  ;;  %v899_v55 = vsel %vm3076_vm9, %v2010_v30, %v2011_v60  ;;  %v1830_v57 = vpack.c.bf16 %v788_v46, %v2010_v30 }
 0x20d   : > { %v910_v56 = vpack.c.bf16 %v789_v9, %v899_v55 }
 0x20e   : > { %v871_v54 = vsel %vm511_vm4, %v2000_v50, %v2001_v49  ;;  %v1821_v7 = vpack.c.bf16 %v2000_v50, %v1995_v18 }
 0x20f   : > { %v2004_v28 = vpop.permute.xlu1 %2003  ;;  %v904_v29 = vpack.c.bf16 %v871_v54, %v861_v53 }
 0x210   : > { %v2006_v36 = vunpack.i.h.bf16 %v2004_v28  ;;  %v2005_v40 = vunpack.i.l.bf16 %v2004_v28 }
 0x211   : > { %941 = vmatprep.subr.bf16.mxu0 %v904_v29 }
 0x212   : > { %1822 = vmatpush1.bf16.msk.msra.mxu0 %vm1776_vm10, %v1821_v7  ;;  %v891_v19 = vsel %vm3076_vm9, %v2005_v40, %v2006_v36  ;;  %v1826_v39 = vpack.c.bf16 %v2005_v40, %v1990_v52 }
 0x213   : > { %v906_v38 = vpack.c.bf16 %v891_v19, %v881_v44 }
 0x215   : > { %943 = vmatprep.subr.bf16.mxu0 %v906_v38 }
 0x216   : > { %1827 = vmatpush1.bf16.msk.msra.mxu0 %vm1781_vm14, %v1826_v39 }
 0x217   : > { %945 = vmatprep.subr.bf16.mxu0 %v908_v33 }
 0x21a   : > { %946 = vmatpush1.bf16.msra.mxu0 %v907_v23  ;;  %v925_v41 = vpop.permute.xlu0 %924 }
 0x21b   : > { %947 = vmatprep.subr.bf16.mxu0 %v910_v56 }
 0x21e   : > { %1831 = vmatpush1.bf16.msk.msra.mxu0 %vm2638_vm0, %v1830_v57  ;;  %v998_v12 = vpop.permute.xlu0 %997 }
 0x21f   : > { %1832 = vmatprep.subr.msk.bf16.mxu0 %vm568_vm15, %v912_v59 }
 0x220   : > { %v920_v35 = vpop.permute.xlu1 %919 }
 0x222   : > { %950 = vmatpush1.bf16.msra.mxu0 %v936_v2 }
 0x224   : > { %v993_v62 = vpop.permute.xlu1 %992 }
 0x225   : > { %1833 = vmatmul.mubr.msk.bf16.vlgmr.msra.gmra.mrb[8].mxu0 %vm564_vm1, %v2012_v37 }
 0x2f8   : > { %v975_v43 = vpop.f32.mrb[8].mxu0 }
 0x2f9   : > { %v976_v23 = vadd.f32 %v975_v43, %v920_v35  ;;  %v977_v33 = vpop.f32.mrb[9].mxu0 }
 0x2fa   : > { %v978_v63 = vadd.f32 %v977_v33, %v920_v35  ;;  %v979_v42 = vpop.f32.mrb[10].mxu0 }
 0x2fb   : > { %vm984_vm5 = vcmp.ge.f32.partialorder %v976_v23, 0.0  ;;  %v1000_v0 = vmul.f32 %v993_v62, %v976_v23  ;;  %v980_v1 = vadd.f32 %v979_v42, %v925_v41  ;;  %v981_v3 = vpop.f32.mrb[11].mxu0 }
 0x2fc   : > { %vm985_vm10 = vcmp.ge.f32.partialorder %v978_v63, 0.0  ;;  %v1001_v8 = vmul.f32 %v993_v62, %v978_v63  ;;  %v982_v15 = vadd.f32 %v981_v3, %v925_v41 }
 0x2fd   : > { %v1004_v26 = vsel %vm984_vm5, %v976_v23, %v1000_v0   ;;  %vm986_vm14 = vcmp.ge.f32.partialorder %v980_v1, 0.0  ;;  %v1002_v47 = vmul.f32 %v998_v12, %v980_v1 }
 0x2fe   : > { %v1005_v20 = vsel %vm985_vm10, %v978_v63, %v1001_v8   ;;  %vm987_vm15 = vcmp.ge.f32.partialorder %v982_v15, 0.0  ;;  %v1003_v25 = vmul.f32 %v998_v12, %v982_v15 }
 0x2ff   : > { %v1006_v32 = vsel %vm986_vm14, %v980_v1, %v1002_v47  }
 0x300   : > { %v1007_v46 = vsel %vm987_vm15, %v982_v15, %v1003_v25  }
 0x301 LB: >> { %v2023_v9 = vpack.i.bf16 %v2323_v20, %v2327_v26  ;;  %v1018_v31 = vmul.f32 %v2327_v26, %v2458_v14  ;;  %v1019_v11 = vmul.f32 %v2323_v20, %v2484_v24  ;;  %v1119_v6 = vpack.c.bf16 %v2319_v32, %v2327_v26  ;;  %s2339_s20 = smov 16   ;;  %s2340_s22 = smov 17   ;;  %vm2849_vm1 = vmpackc.low %vm2572_vm7, %vm2572_vm7  ;;  %s2331_s19 = sphi %s2781_s19, %s1013_s19   ;;  %v2327_v26 = vphi %v1004_v26, %v3107_v26   ;;  %v2323_v20 = vphi %v1005_v20, %v3106_v20   ;;  %v2319_v32 = vphi %v1006_v32, %v3105_v32   ;;  %v2315_v46 = vphi %v1007_v46, %v3104_v46  }
 0x302   : >> { %v1120_v4 = vpack.c.bf16 %v2315_v46, %v2323_v20  ;;  %v1020_v5 = vmul.f32 %v2319_v32, %v2458_v14  ;;  %v1021_v10 = vmul.f32 %v2315_v46, %v2484_v24  ;;  %v2028_v17 = vpack.i.bf16 %v2315_v46, %v2319_v32  ;;  %s2341_s23 = smov 15   ;;  %s2342_s24 = smov 1   ;;  %vm2873_vm10 = vmpackc.low %vm2594_vm11, %vm2594_vm11 }
 0x303   : >> { %2024 = vrot.lane.b32.xlu1 %v2023_v9, %s2339_s20  ;;  %v2013_v16 = vpack.i.bf16 %v1019_v11, %v1018_v31  ;;  %v1024_v18 = vmul.f32 %v2319_v32, %v2456_v13  ;;  %v1025_v48 = vmul.f32 %v2315_v46, %v2476_v21  ;;  %v1022_v50 = vmul.f32 %v2327_v26, %v2456_v13  ;;  %s2343_s25 = smov 127   ;;  %s2344_s26 = smov 113  }
 0x304   : >> { %v2018_v49 = vpack.i.bf16 %v1021_v10, %v1020_v5  ;;  %v1023_v51 = vmul.f32 %v2323_v20, %v2476_v21  ;;  %v2068_v28 = vpack.i.bf16 %v1020_v5, %v1018_v31  ;;  %v2063_v29 = vpack.i.bf16 %v1021_v10, %v1019_v11  ;;  %s2345_s27 = smov 112   ;;  %s2346_s28 = smov 111  }
 0x305   : >> { %2014 = vrot.lane.b32.xlu0 %v2013_v16, %s2340_s22  ;;  %v2038_v52 = vpack.i.bf16 %v1025_v48, %v1024_v18  ;;  %v2058_v54 = vpack.i.bf16 %v1024_v18, %v1022_v50  ;;  %v2078_v7 = vpack.i.bf16 %v2319_v32, %v2327_v26  ;;  %v2073_v36 = vpack.i.bf16 %v2315_v46, %v2323_v20  ;;  %s1852_s29 = sshll.u32 %s2331_s19, 4  ;;  %s1013_s19 = sadd.s32 1, %s2331_s19  }
 0x306   : >> { %v2033_v53 = vpack.i.bf16 %v1023_v51, %v1022_v50  ;;  %v2053_v27 = vpack.i.bf16 %v1025_v48, %v1023_v51  ;;  %s2830_s18 = scalar_lea.vmem %s3066_s7, %s1852_s29  ;;  %v2347_v60 = vmov 0   ;;  %vm3077_vm0 = vcmask 121856   ;;  %p1010_p4 = scmp.ge.s32.totalorder %s1013_s19, 6  }
 0x307   : >> { %2029 = vrot.lane.b32.xlu1 %v2028_v17, %s2339_s20  ;;  %v2097_v40 = vld [vmem:[%s2830_s18 + $0x4] ss:$8 sps:$4 sm:$0xff]   ;;  %2093 = vset.pattern.permute.xlu0 %v2347_v60  ;;  %vm3090_vm9 = vcmask 7168   ;;  %vm3072_vm3 = vcmask 1039360   ;;  %vm3073_vm12 = vcmask 924672   ;;  %vm2199_vm13 = vmneg %vm3077_vm0  ;;  %vm3074_vm5 = vcmask 916480  }
 0x308   : >> { %1839 = vmatprep.mubr.msk.bf16.mxu0 %vm511_vm4, %v2097_v40  ;;  %2094 = vset.pattern.permute.xlu1 %v2347_v60  ;;  %vm2862_vm2 = vmpackc.low %vm2199_vm13, %vm2199_vm13  ;;  %vm3075_vm14 = vcmask 908288   ;;  %s2348_s19 = smov (%p1010_p4), 15   ;;  %vm3108_vm7 = vcmask (%p1010_p4), 121856  }
 0x309   : >> { %2019 = vrot.lane.b32.xlu0 %v2018_v49, %s2340_s22  ;;  %vm2889_vm15 = vmpackc.low %vm3072_vm3, %vm3072_vm3 }
 0x30a   : >> { %vm2899_vm13 = vmpackc.low %vm3073_vm12, %vm3073_vm12 }
 0x30b   : >> { %2039 = vrot.lane.b32.xlu1 %v2038_v52, %s2341_s23 }
 0x30d   : >> { %2034 = vrot.lane.b32.xlu0 %v2033_v53, %s2341_s23  ;;  %s1231_s23 = scalar_lea.vmem %s3067_s8, %s1852_s29 }
 0x30e   : >> { %v1233_v30 = vld [vmem:[%s1231_s23 + $0x8] sm:$0xff]  ;;  %v1232_v44 = vld [vmem:[%s1231_s23] sm:$0xff] }
 0x30f   : >> { %2049 = vrot.lane.b32.xlu1 %v2018_v49, %s2342_s24 }
 0x311   : >> { %2044 = vrot.lane.b32.xlu0 %v2013_v16, %s2342_s24 }
 0x313   : >> { %2059 = vrot.lane.b32.xlu1 %v2058_v54, %s2343_s25 }
 0x315   : >> { %2054 = vrot.lane.b32.xlu0 %v2053_v27, %s2343_s25 }
 0x317   : >> { %2069 = vrot.lane.b32.xlu1 %v2068_v28, %s2344_s26 }
 0x319   : >> { %2064 = vrot.lane.b32.xlu0 %v2063_v29, %s2344_s26  ;;  %s1303_s26 = scalar_lea.vmem %s3068_s9, %s1852_s29 }
 0x31a   : >> { %v1304_v19 = vld [vmem:[%s1303_s26] sm:$0xff]  ;;  %v1305_v38 = vld [vmem:[%s1303_s26 + $0x8] sm:$0xff] }
 0x31b   : >> { %2079 = vrot.lane.b32.xlu1 %v2078_v7, %s2345_s27 }
 0x31d   : >> { %2074 = vrot.lane.b32.xlu0 %v2073_v36, %s2345_s27  ;;  %s2349_s27 = smov (%p1010_p4), 127  }
 0x31f   : >> { %2089 = vrot.lane.b32.xlu1 %v2058_v54, %s2346_s28 }
 0x321   : >> { %2084 = vrot.lane.b32.xlu0 %v2053_v27, %s2346_s28  ;;  %s2352_s28 = smov (%p1010_p4), 111  }
 0x323   : >> { %1241 = vperm.xlu1 %2094, %v1233_v30  }
 0x325   : >> { %1236 = vperm.xlu0 %2093, %v1232_v44  }
 0x327   : >> { %1308 = vperm.xlu1 %2094, %v1304_v19  }
 0x329   : >> { %1313 = vperm.xlu0 %2093, %v1305_v38  }
 0x32b   : > { %2179 = vset.pattern.permute.xlu1 (%p1010_p4), %v2337_v45 }
 0x32d   : > { %2178 = vset.pattern.permute.xlu0 (%p1010_p4), %v2337_v45 }
 0x375   : >> { %v2025_v39 = vpop.permute.xlu1 %2024 }
 0x376   : >> { %v2027_v55 = vunpack.i.h.bf16 %v2025_v39  ;;  %v2026_v56 = vunpack.i.l.bf16 %v2025_v39 }
 0x377   : >> { %v2015_v57 = vpop.permute.xlu0 %2014 }
 0x378   : >> { %v2017_v59 = vunpack.i.h.bf16 %v2015_v57  ;;  %v2016_v61 = vunpack.i.l.bf16 %v2015_v57  ;;  %v1062_v37 = vsel %vm511_vm4, %v2026_v56, %v2027_v55 }
 0x379   : >> { %v2030_v2 = vpop.permute.xlu1 %2029 }
 0x37a   : >> { %v2032_v35 = vunpack.i.h.bf16 %v2030_v2  ;;  %v2031_v41 = vunpack.i.l.bf16 %v2030_v2  ;;  %v1038_v63 = vsel %vm500_vm6, %v2016_v61, %v2017_v59 }
 0x37b   : >> { %v2020_v43 = vpop.permute.xlu0 %2019 }
 0x37c   : >> { %v1063_v23 = vsel %vm511_vm4, %v2031_v41, %v2032_v35  ;;  %v2022_v33 = vunpack.i.h.bf16 %v2020_v43  ;;  %v2021_v62 = vunpack.i.l.bf16 %v2020_v43  ;;  %v2197_v54 = vpack.c.bf16 %v2031_v41, %v2026_v56 }
 0x37d   : >> { %v1071_v42 = vpack.c.bf16 %v1063_v23, %v1062_v37  ;;  %v2040_v0 = vpop.permute.xlu1 %2039 }
 0x37e   : >> { %v1039_v1 = vsel %vm500_vm6, %v2021_v62, %v2022_v33  ;;  %v2042_v3 = vunpack.i.h.bf16 %v2040_v0  ;;  %v2041_v12 = vunpack.i.l.bf16 %v2040_v0  ;;  %v2192_v17 = vpack.c.bf16 %v2021_v62, %v2016_v61 }
 0x37f   : >> { %v1047_v8 = vpack.c.bf16 %v1039_v1, %v1038_v63  ;;  %v2035_v15 = vpop.permute.xlu0 %2034 }
 0x380   : >> { %v1088_v47 = vsel %vm3077_vm0, %v2041_v12, %v2042_v3  ;;  %v2037_v25 = vunpack.i.h.bf16 %v2035_v15  ;;  %v2036_v9 = vunpack.i.l.bf16 %v2035_v15 }
 0x381   : >> { %v2050_v31 = vpop.permute.xlu1 %2049  ;;  %1256 = vmatprep.subr.bf16.mxu0 %v1047_v8 }
 0x382   : >> { %v1087_v11 = vsel %vm3077_vm0, %v2036_v9, %v2037_v25  ;;  %v2052_v5 = vunpack.i.h.bf16 %v2050_v31  ;;  %v2051_v10 = vunpack.i.l.bf16 %v2050_v31  ;;  %2193 = vmatpush1.bf16.msk.msra.mxu0 %vm2849_vm1, %v2192_v17  ;;  %v2202_v38 = vpack.c.bf16 %v2041_v12, %v2036_v9 }
 0x383   : >> { %v1096_v18 = vpack.c.bf16 %v1088_v47, %v1087_v11  ;;  %v2045_v48 = vpop.permute.xlu0 %2044  ;;  %1258 = vmatprep.subr.bf16.mxu0 %v1071_v42  ;;  %v2180_v11 = vld [vmem:[%s3069_s10] ss:$8 sps:$4 sm:$0xff] (%p1010_p4)  }
 0x384   : >> { %v1108_v49 = vsel %vm3090_vm9, %v2051_v10, %v2052_v5  ;;  %v2047_v50 = vunpack.i.h.bf16 %v2045_v48  ;;  %v2046_v51 = vunpack.i.l.bf16 %v2045_v48 }
 0x385   : >> { %v2060_v52 = vpop.permute.xlu1 %2059 }
 0x386   : >> { %v1107_v53 = vsel %vm3090_vm9, %v2046_v51, %v2047_v50  ;;  %2198 = vmatpush1.bf16.msk.msra.mxu0 %vm2579_vm8, %v2197_v54  ;;  %v2062_v27 = vunpack.i.h.bf16 %v2060_v52  ;;  %v2061_v28 = vunpack.i.l.bf16 %v2060_v52  ;;  %v2207_v43 = vpack.c.bf16 %v2051_v10, %v2046_v51  ;;  %v2186_v10 = vld [vmem:[%s3069_s10 + $0x24] ss:$8 sps:$4 sm:$0xff] (%p1010_p4)  }
 0x387   : >> { %v1116_v29 = vpack.c.bf16 %v1108_v49, %v1107_v53  ;;  %v2055_v7 = vpop.permute.xlu0 %2054  ;;  %1260 = vmatprep.subr.bf16.mxu0 %v1096_v18  ;;  %v2095_v49 = vld [vmem:[%s2830_s18] ss:$8 sps:$4 sm:$0xff]  }
 0x388   : >> { %v2057_v36 = vunpack.i.h.bf16 %v2055_v7  ;;  %v2056_v40 = vunpack.i.l.bf16 %v2055_v7  ;;  %v2188_v18 = vld [vmem:[%s3069_s10 + $0x20] ss:$8 sps:$4 sm:$0xff] (%p1010_p4)  }
 0x389   : >> { %v2070_v60 = vpop.permute.xlu1 %2069 }
 0x38a   : >> { %v1133_v30 = vsel %vm3072_vm3, %v2062_v27, %v2057_v36  ;;  %v1132_v44 = vsel %vm3072_vm3, %v2061_v28, %v2056_v40  ;;  %2203 = vmatpush1.bf16.msk.msra.mxu0 %vm2862_vm2, %v2202_v38  ;;  %v2072_v55 = vunpack.i.h.bf16 %v2070_v60  ;;  %v2071_v56 = vunpack.i.l.bf16 %v2070_v60  ;;  %vm2907_vm3 = vmpackc.low %vm3074_vm5, %vm3074_vm5 }
 0x38b   : >> { %v1140_v39 = vpack.c.bf16 %v1133_v30, %v1132_v44  ;;  %v2065_v57 = vpop.permute.xlu0 %2064  ;;  %1262 = vmatprep.subr.bf16.mxu0 %v1116_v29  ;;  %v2210_v46 = vpack.c.bf16 %v2057_v36, %v2056_v40 }
 0x38c   : >> { %v2067_v59 = vunpack.i.h.bf16 %v2065_v57  ;;  %v2066_v61 = vunpack.i.l.bf16 %v2065_v57 }
 0x38d   : >> { %v2080_v2 = vpop.permute.xlu1 %2079 }
 0x38e   : >> { %v1154_v37 = vsel %vm3073_vm12, %v2072_v55, %v2067_v59  ;;  %v1153_v35 = vsel %vm3073_vm12, %v2071_v56, %v2066_v61  ;;  %2208 = vmatpush1.bf16.msk.msra.mxu0 %vm2873_vm10, %v2207_v43  ;;  %v2082_v33 = vunpack.i.h.bf16 %v2080_v2  ;;  %v2081_v62 = vunpack.i.l.bf16 %v2080_v2  ;;  %vm2915_vm12 = vmpackc.low %vm3075_vm14, %vm3075_vm14 }
 0x38f   : >> { %v1161_v23 = vpack.c.bf16 %v1154_v37, %v1153_v35  ;;  %v2075_v63 = vpop.permute.xlu0 %2074  ;;  %1264 = vmatprep.subr.bf16.mxu0 %v1120_v4  ;;  %v2213_v5 = vpack.c.bf16 %v2067_v59, %v2066_v61 }
 0x390   : >> { %v2077_v42 = vunpack.i.h.bf16 %v2075_v63  ;;  %v2076_v0 = vunpack.i.l.bf16 %v2075_v63 }
 0x391   : >> { %v2090_v1 = vpop.permute.xlu1 %2089 }
 0x392   : >> { %v1175_v3 = vsel %vm3074_vm5, %v2082_v33, %v2077_v42  ;;  %v1174_v12 = vsel %vm3074_vm5, %v2081_v62, %v2076_v0  ;;  %1265 = vmatpush1.bf16.msra.mxu0 %v1119_v6  ;;  %v2092_v15 = vunpack.i.h.bf16 %v2090_v1  ;;  %v2091_v47 = vunpack.i.l.bf16 %v2090_v1 }
 0x393   : >> { %v1182_v8 = vpack.c.bf16 %v1175_v3, %v1174_v12  ;;  %v2085_v25 = vpop.permute.xlu0 %2084  ;;  %2211 = vmatprep.subr.msk.bf16.mxu0 %vm2889_vm15, %v2210_v46  ;;  %v2216_v17 = vpack.c.bf16 %v2077_v42, %v2076_v0 }
 0x394   : >> { %v2087_v9 = vunpack.i.h.bf16 %v2085_v25  ;;  %v2086_v31 = vunpack.i.l.bf16 %v2085_v25  ;;  %v1538_v25 = vld [vmem:[%s3070_s11 + $0x8] sm:$0xff] (%p1010_p4) }
 0x396   : >> { %v1196_v26 = vsel %vm3075_vm14, %v2092_v15, %v2087_v9  ;;  %v1195_v32 = vsel %vm3075_vm14, %v2091_v47, %v2086_v31  ;;  %1267 = vmatpush1.bf16.msra.mxu0 %v1140_v39  ;;  %v2219_v48 = vpack.c.bf16 %v2087_v9, %v2086_v31  ;;  %v2182_v15 = vld [vmem:[%s3069_s10 + $0x4] ss:$8 sps:$4 sm:$0xff] (%p1010_p4)   ;;  %v2185_v47 = vld [vmem:[%s3069_s10 + $0x14] ss:$8 sps:$4 sm:$0xff] (%p1010_p4)  }
 0x397   : >> { %v1203_v6 = vpack.c.bf16 %v1196_v26, %v1195_v32  ;;  %2214 = vmatprep.subr.msk.bf16.mxu0 %vm2899_vm13, %v2213_v5  ;;  %1847 = vmatprep.mubr.msk.bf16.mxu1 (%p1010_p4), %vm511_vm4, %v2185_v47  ;;  %v1540_v9 = vld [vmem:[%s3070_s11 + $0x18] sm:$0xff] (%p1010_p4)  ;;  %v1541_v31 = vld [vmem:[%s3070_s11 + $0x20] sm:$0xff] (%p1010_p4) }
 0x39a   : >> { %1269 = vmatpush1.bf16.msra.mxu0 %v1161_v23 }
 0x39b   : >> { %2217 = vmatprep.subr.msk.bf16.mxu0 %vm2907_vm3, %v2216_v17 }
 0x39e   : >> { %1271 = vmatpush1.bf16.msra.mxu0 %v1182_v8 }
 0x39f   : >> { %2220 = vmatprep.subr.msk.bf16.mxu0 %vm2915_vm12, %v2219_v48 }
 0x3a2   : >> { %1273 = vmatpush1.bf16.msra.mxu0 %v1203_v6  ;;  %v1242_v50 = vpop.permute.xlu1 %1241 }
 0x3a4   : >> { %v1237_v51 = vpop.permute.xlu0 %1236 }
 0x3a5   : >> { %1289 = vmatmul.mubr.bf16.vlgmr.msra.gmra.mrb[0].mxu0 %v2095_v49 }
 0x3a6   : >> { %v1309_v53 = vpop.permute.xlu1 %1308  ;;  %1846 = vmatprep.mubr.msk.bf16.mxu0 (%p1010_p4), %vm511_vm4, %v2182_v15 }
 0x3a8   : >> { %v1314_v60 = vpop.permute.xlu0 %1313 }
 0x478   : >> { %v1290_v52 = vpop.f32.mrb[0].mxu0 }
 0x479   : >> { %v1291_v54 = vadd.f32 %v1290_v52, %v1237_v51  ;;  %v1292_v27 = vpop.f32.mrb[1].mxu0 }
 0x47a   : >> { %v1293_v28 = vadd.f32 %v1292_v27, %v1237_v51  ;;  %v1294_v29 = vpop.f32.mrb[2].mxu0 }
 0x47b   : >> { %vm1299_vm5 = vcmp.ge.f32.partialorder %v1291_v54, 0.0  ;;  %v1316_v7 = vmul.f32 %v1309_v53, %v1291_v54  ;;  %v1295_v36 = vadd.f32 %v1294_v29, %v1242_v50  ;;  %v1296_v40 = vpop.f32.mrb[3].mxu0  ;;  %1012 = sbr.rel (!%p1010_p4) target bundleno = 769 (0x301), region = 108 }
 0x47c   : >> { %vm1300_vm14 = vcmp.ge.f32.partialorder %v1293_v28, 0.0  ;;  %v1317_v30 = vmul.f32 %v1309_v53, %v1293_v28  ;;  %v1297_v44 = vadd.f32 %v1296_v40, %v1242_v50 }
 0x47d   : >> { %v1320_v38 = vsel %vm1299_vm5, %v1291_v54, %v1316_v7   ;;  %vm1301_vm9 = vcmp.ge.f32.partialorder %v1295_v36, 0.0  ;;  %v1318_v39 = vmul.f32 %v1314_v60, %v1295_v36 }
 0x47e   : >> { %v1321_v55 = vsel %vm1300_vm14, %v1293_v28, %v1317_v30   ;;  %vm1302_vm0 = vcmp.ge.f32.partialorder %v1297_v44, 0.0  ;;  %v1319_v56 = vmul.f32 %v1314_v60, %v1297_v44  ;;  %v3107_v26 = vmov %v1320_v38 }
 0x47f   : >> { %v1322_v57 = vsel %vm1301_vm9, %v1295_v36, %v1318_v39   ;;  %v3106_v20 = vmov %v1321_v55  ;;  %v2108_v61 = vpack.i.bf16 (%p1010_p4), %v1321_v55, %v1320_v38  ;;  %v1324_v2 = vmul.f32 (%p1010_p4), %v2458_v14, %v1320_v38  ;;  %v1542_v26 = vld [vmem:[%s3070_s11 + $0x28] sm:$0xff] (%p1010_p4)  ;;  %vm3109_vm9 = vmmov (%p1010_p4), %vm3108_vm7 }
 0x480   : >> { %v1323_v59 = vsel %vm1302_vm0, %v1297_v44, %v1319_v56   ;;  %v3105_v32 = vmov %v1322_v57  ;;  %v1325_v37 = vmul.f32 (%p1010_p4), %v2484_v24, %v1321_v55  ;;  %v1326_v35 = vmul.f32 (%p1010_p4), %v2458_v14, %v1322_v57  ;;  %v1537_v20 = vld [vmem:[%s3070_s11] sm:$0xff] (%p1010_p4) }
 0x481   : >> { %v3104_v46 = vmov %v1323_v59  ;;  %v1327_v43 = vmul.f32 (%p1010_p4), %v2484_v24, %v1323_v59  ;;  %2109 = vrot.lane.b32.xlu1 (%p1010_p4), %v2108_v61, %s2334_s13  ;;  %v2113_v33 = vpack.i.bf16 (%p1010_p4), %v1323_v59, %v1322_v57  ;;  %v1330_v62 = vmul.f32 (%p1010_p4), %v2456_v13, %v1322_v57 }
 0x482   : > { %v2098_v23 = vpack.i.bf16 %v1325_v37, %v1324_v2  ;;  %v1331_v22 = vmul.f32 %v2476_v21, %v1323_v59  ;;  %v1328_v63 = vmul.f32 %v2456_v13, %v1320_v38  ;;  %v1329_v42 = vmul.f32 %v2476_v21, %v1321_v55  ;;  %v1539_v46 = vld [vmem:[%s3070_s11 + $0x10] sm:$0xff] }
 0x483   : > { %v2103_v58 = vpack.i.bf16 %v1327_v43, %v1326_v35  ;;  %v2948_v0 = vpack.c.bf16 %v1323_v59, %v1321_v55  ;;  %v2950_v1 = vpack.c.bf16 %v1322_v57, %v1320_v38  ;;  %v2153_v21 = vpack.i.bf16 %v1326_v35, %v1324_v2 }
 0x484   : > { %2099 = vrot.lane.b32.xlu0 %v2098_v23, %s2335_s14  ;;  %v2123_v14 = vpack.i.bf16 %v1331_v22, %v1330_v62  ;;  %v2118_v24 = vpack.i.bf16 %v1329_v42, %v1328_v63  ;;  %v2143_v45 = vpack.i.bf16 %v1330_v62, %v1328_v63  ;;  %v2138_v13 = vpack.i.bf16 %v1331_v22, %v1329_v42 }
 0x485   : > { %2114 = vrot.lane.b32.xlu1 %v2113_v33, %s2334_s13  ;;  %v2148_v3 = vpack.i.bf16 %v1327_v43, %v1325_v37  ;;  %s2350_s13 = smov 113   ;;  %v2163_v12 = vpack.i.bf16 %v1322_v57, %v1320_v38  ;;  %v2158_v8 = vpack.i.bf16 %v1323_v59, %v1321_v55  ;;  %vm3112_vm0 = vcmask 1039360  }
 0x488   : > { %2104 = vrot.lane.b32.xlu0 %v2103_v58, %s2335_s14  ;;  %s2351_s14 = smov 112  }
 0x489   : > { %2124 = vrot.lane.b32.xlu1 %v2123_v14, %s2348_s19 }
 0x48c   : > { %2119 = vrot.lane.b32.xlu0 %v2118_v24, %s2348_s19 }
 0x48d   : > { %2134 = vrot.lane.b32.xlu1 %v2103_v58, %s2336_s15 }
 0x490   : > { %2129 = vrot.lane.b32.xlu0 %v2098_v23, %s2336_s15 }
 0x491   : > { %2144 = vrot.lane.b32.xlu1 %v2143_v45, %s2349_s27 }
 0x494   : > { %2139 = vrot.lane.b32.xlu0 %v2138_v13, %s2349_s27 }
 0x495   : > { %2154 = vrot.lane.b32.xlu1 %v2153_v21, %s2350_s13 }
 0x498   : > { %2149 = vrot.lane.b32.xlu0 %v2148_v3, %s2350_s13 }
 0x499   : > { %2164 = vrot.lane.b32.xlu1 %v2163_v12, %s2351_s14 }
 0x49c   : > { %2159 = vrot.lane.b32.xlu0 %v2158_v8, %s2351_s14 }
 0x49d   : > { %2174 = vrot.lane.b32.xlu1 %v2143_v45, %s2352_s28 }
 0x4a0   : > { %2169 = vrot.lane.b32.xlu0 %v2138_v13, %s2352_s28 }
 0x4a1   : > { %1550 = vperm.xlu1 %2179, %v1538_v25  }
 0x4a4   : > { %1545 = vperm.xlu0 %2178, %v1537_v20  }
 0x4a5   : > { %1555 = vperm.xlu1 %2179, %v1539_v46  }
 0x4a8   : > { %1560 = vperm.xlu0 %2178, %v1540_v9  }
 0x4a9   : > { %1565 = vperm.xlu1 %2179, %v1541_v31  }
 0x4ac   : > { %1570 = vperm.xlu0 %2178, %v1542_v26  }
 0x4f3   : > { %v2110_v32 = vpop.permute.xlu1 %2109 }
 0x4f4   : > { %v2112_v6 = vunpack.i.h.bf16 %v2110_v32  ;;  %v2111_v5 = vunpack.i.l.bf16 %v2110_v32 }
 0x4f6   : > { %v2100_v17 = vpop.permute.xlu0 %2099  ;;  %v1368_v51 = vsel %vm511_vm4, %v2111_v5, %v2112_v6 }
 0x4f7   : > { %v2102_v48 = vunpack.i.h.bf16 %v2100_v17  ;;  %v2101_v49 = vunpack.i.l.bf16 %v2100_v17  ;;  %v2115_v50 = vpop.permute.xlu1 %2114 }
 0x4f8   : > { %v2117_v52 = vunpack.i.h.bf16 %v2115_v50  ;;  %v2116_v53 = vunpack.i.l.bf16 %v2115_v50 }
 0x4f9   : > { %v1344_v7 = vsel %vm500_vm6, %v2101_v49, %v2102_v48 }
 0x4fa   : > { %v2105_v54 = vpop.permute.xlu0 %2104  ;;  %v1369_v27 = vsel %vm511_vm4, %v2116_v53, %v2117_v52  ;;  %v2234_v42 = vpack.c.bf16 %v2116_v53, %v2111_v5 }
 0x4fb   : > { %v2107_v28 = vunpack.i.h.bf16 %v2105_v54  ;;  %v2106_v29 = vunpack.i.l.bf16 %v2105_v54  ;;  %v1377_v36 = vpack.c.bf16 %v1369_v27, %v1368_v51  ;;  %v2125_v40 = vpop.permute.xlu1 %2124 }
 0x4fc   : > { %v2127_v30 = vunpack.i.h.bf16 %v2125_v40  ;;  %v2126_v44 = vunpack.i.l.bf16 %v2125_v40 }
 0x4fd   : > { %v1345_v60 = vsel %vm500_vm6, %v2106_v29, %v2107_v28  ;;  %v2224_v35 = vpack.c.bf16 %v2106_v29, %v2101_v49  ;;  %vm3110_vm6 = vcmask 7168  }
 0x4fe   : > { %v1353_v38 = vpack.c.bf16 %v1345_v60, %v1344_v7  ;;  %v2120_v39 = vpop.permute.xlu0 %2119  ;;  %v1394_v55 = vsel %vm3108_vm7, %v2126_v44, %v2127_v30  ;;  %vm3111_vm11 = vmmov %vm3110_vm6 }
 0x4ff   : > { %v2122_v56 = vunpack.i.h.bf16 %v2120_v39  ;;  %v2121_v57 = vunpack.i.l.bf16 %v2120_v39  ;;  %v2135_v59 = vpop.permute.xlu1 %2134 }
 0x500   : > { %1609 = vmatprep.subr.bf16.mxu0 %v1353_v38  ;;  %1853 = vmatprep.subr.bf16.mxu1 %v1353_v38  ;;  %v2137_v2 = vunpack.i.h.bf16 %v2135_v59  ;;  %v2136_v37 = vunpack.i.l.bf16 %v2135_v59 }
 0x501   : > { %v1393_v61 = vsel %vm3109_vm9, %v2121_v57, %v2122_v56  ;;  %2225 = vmatpush1.bf16.msk.msra.mxu0 %vm2849_vm1, %v2224_v35  ;;  %2230 = vmatpush1.bf16.msk.msra.mxu1 %vm2849_vm1, %v2224_v35  ;;  %vm3113_vm1 = vmmov %vm3112_vm0  ;;  %v2244_v15 = vpack.c.bf16 %v2126_v44, %v2121_v57  ;;  %v2183_v44 = vld [vmem:[%s3069_s10 + $0x10] ss:$8 sps:$4 sm:$0xff]  }
 0x502   : > { %v1402_v43 = vpack.c.bf16 %v1394_v55, %v1393_v61  ;;  %v2130_v23 = vpop.permute.xlu0 %2129  ;;  %1611 = vmatprep.subr.bf16.mxu0 %v1377_v36  ;;  %1854 = vmatprep.subr.bf16.mxu1 %v1377_v36  ;;  %v1414_v33 = vsel %vm3110_vm6, %v2136_v37, %v2137_v2 }
 0x503   : > { %v2132_v62 = vunpack.i.h.bf16 %v2130_v23  ;;  %v2131_v22 = vunpack.i.l.bf16 %v2130_v23  ;;  %v2145_v58 = vpop.permute.xlu1 %2144 }
 0x504   : > { %v2147_v16 = vunpack.i.h.bf16 %v2145_v58  ;;  %v2146_v14 = vunpack.i.l.bf16 %v2145_v58 }
 0x505   : > { %v1413_v63 = vsel %vm3111_vm11, %v2131_v22, %v2132_v62  ;;  %2235 = vmatpush1.bf16.msk.msra.mxu0 %vm2579_vm8, %v2234_v42  ;;  %2240 = vmatpush1.bf16.msk.msra.mxu1 %vm2579_vm8, %v2234_v42  ;;  %vm3114_vm8 = vcmask 924672   ;;  %v2254_v6 = vpack.c.bf16 %v2136_v37, %v2131_v22 }
 0x506   : > { %v1422_v24 = vpack.c.bf16 %v1414_v33, %v1413_v63  ;;  %v2140_v45 = vpop.permute.xlu0 %2139  ;;  %1613 = vmatprep.subr.bf16.mxu0 %v1402_v43  ;;  %1855 = vmatprep.subr.bf16.mxu1 %v1402_v43  ;;  %vm3115_vm5 = vmmov %vm3114_vm8 }
 0x507   : > { %v2142_v13 = vunpack.i.h.bf16 %v2140_v45  ;;  %v2141_v21 = vunpack.i.l.bf16 %v2140_v45  ;;  %v2155_v3 = vpop.permute.xlu1 %2154 }
 0x508   : > { %v2157_v47 = vunpack.i.h.bf16 %v2155_v3  ;;  %v2156_v25 = vunpack.i.l.bf16 %v2155_v3 }
 0x509   : > { %v1439_v12 = vsel %vm3112_vm0, %v2147_v16, %v2142_v13  ;;  %v1438_v8 = vsel %vm3113_vm1, %v2146_v14, %v2141_v21  ;;  %2245 = vmatpush1.bf16.msk.msra.mxu0 %vm2862_vm2, %v2244_v15  ;;  %2250 = vmatpush1.bf16.msk.msra.mxu1 %vm2862_vm2, %v2244_v15  ;;  %vm3116_vm2 = vcmask 916480   ;;  %v2262_v29 = vpack.c.bf16 %v2142_v13, %v2141_v21 }
 0x50a   : > { %v1446_v34 = vpack.c.bf16 %v1439_v12, %v1438_v8  ;;  %v2150_v20 = vpop.permute.xlu0 %2149  ;;  %1615 = vmatprep.subr.bf16.mxu0 %v1422_v24  ;;  %1856 = vmatprep.subr.bf16.mxu1 %v1422_v24  ;;  %vm3117_vm14 = vmmov %vm3116_vm2 }
 0x50b   : > { %v2152_v46 = vunpack.i.h.bf16 %v2150_v20  ;;  %v2151_v9 = vunpack.i.l.bf16 %v2150_v20  ;;  %v2165_v31 = vpop.permute.xlu1 %2164 }
 0x50c   : > { %v2167_v5 = vunpack.i.h.bf16 %v2165_v31  ;;  %v2166_v17 = vunpack.i.l.bf16 %v2165_v31 }
 0x50d   : > { %v1460_v26 = vsel %vm3114_vm8, %v2157_v47, %v2152_v46  ;;  %v1459_v32 = vsel %vm3115_vm5, %v2156_v25, %v2151_v9  ;;  %2255 = vmatpush1.bf16.msk.msra.mxu0 %vm2873_vm10, %v2254_v6  ;;  %2260 = vmatpush1.bf16.msk.msra.mxu1 %vm2873_vm10, %v2254_v6  ;;  %vm3118_vm10 = vcmask 908288   ;;  %v2268_v60 = vpack.c.bf16 %v2152_v46, %v2151_v9 }
 0x50e   : > { %v1467_v19 = vpack.c.bf16 %v1460_v26, %v1459_v32  ;;  %v2160_v48 = vpop.permute.xlu0 %2159  ;;  %1617 = vmatprep.subr.bf16.mxu0 %v2948_v0  ;;  %1857 = vmatprep.subr.bf16.mxu1 %v2948_v0  ;;  %vm3119_vm7 = vmmov %vm3118_vm10 }
 0x50f   : > { %v2162_v49 = vunpack.i.h.bf16 %v2160_v48  ;;  %v2161_v50 = vunpack.i.l.bf16 %v2160_v48  ;;  %v2175_v51 = vpop.permute.xlu1 %2174 }
 0x510   : > { %v2177_v54 = vunpack.i.h.bf16 %v2175_v51  ;;  %v2176_v27 = vunpack.i.l.bf16 %v2175_v51 }
 0x511   : > { %v1481_v52 = vsel %vm3116_vm2, %v2167_v5, %v2162_v49  ;;  %v1480_v53 = vsel %vm3117_vm14, %v2166_v17, %v2161_v50  ;;  %1618 = vmatpush1.bf16.msra.mxu0 %v2950_v1  ;;  %1866 = vmatpush1.bf16.msra.mxu1 %v2950_v1  ;;  %v2274_v4 = vpack.c.bf16 %v2162_v49, %v2161_v50 }
 0x512   : > { %v1488_v41 = vpack.c.bf16 %v1481_v52, %v1480_v53  ;;  %v2170_v28 = vpop.permute.xlu0 %2169  ;;  %2263 = vmatprep.subr.msk.bf16.mxu0 %vm2889_vm15, %v2262_v29  ;;  %2266 = vmatprep.subr.msk.bf16.mxu1 %vm2889_vm15, %v2262_v29 }
 0x513   : > { %v2172_v0 = vunpack.i.h.bf16 %v2170_v28  ;;  %v2171_v7 = vunpack.i.l.bf16 %v2170_v28 }
 0x515   : > { %v1502_v36 = vsel %vm3118_vm10, %v2177_v54, %v2172_v0  ;;  %v1501_v40 = vsel %vm3119_vm7, %v2176_v27, %v2171_v7  ;;  %1620 = vmatpush1.bf16.msra.mxu0 %v1446_v34  ;;  %1867 = vmatpush1.bf16.msra.mxu1 %v1446_v34  ;;  %v2280_v30 = vpack.c.bf16 %v2172_v0, %v2171_v7 }
 0x516   : > { %v1509_v1 = vpack.c.bf16 %v1502_v36, %v1501_v40  ;;  %2269 = vmatprep.subr.msk.bf16.mxu0 %vm2899_vm13, %v2268_v60  ;;  %2272 = vmatprep.subr.msk.bf16.mxu1 %vm2899_vm13, %v2268_v60 }
 0x519   : > { %1622 = vmatpush1.bf16.msra.mxu0 %v1467_v19  ;;  %1868 = vmatpush1.bf16.msra.mxu1 %v1467_v19 }
 0x51a   : > { %2275 = vmatprep.subr.msk.bf16.mxu0 %vm2907_vm3, %v2274_v4  ;;  %2278 = vmatprep.subr.msk.bf16.mxu1 %vm2907_vm3, %v2274_v4 }
 0x51d   : > { %1624 = vmatpush1.bf16.msra.mxu0 %v1488_v41  ;;  %1869 = vmatpush1.bf16.msra.mxu1 %v1488_v41 }
 0x51e   : > { %2281 = vmatprep.subr.msk.bf16.mxu0 %vm2915_vm12, %v2280_v30  ;;  %2284 = vmatprep.subr.msk.bf16.mxu1 %vm2915_vm12, %v2280_v30 }
 0x520   : > { %v1551_v38 = vpop.permute.xlu1 %1550 }
 0x521   : > { %1626 = vmatpush1.bf16.msra.mxu0 %v1509_v1  ;;  %1870 = vmatpush1.bf16.msra.mxu1 %v1509_v1 }
 0x523   : > { %v1546_v39 = vpop.permute.xlu0 %1545 }
 0x524   : > { %1642 = vmatmul.mubr.bf16.vlgmr.msra.gmra.mrb[0].mxu0 %v2180_v11  ;;  %1652 = vmatmul.mubr.bf16.vlgmr.msra.gmra.mrb[0].mxu1 %v2183_v44  ;;  %v1556_v55 = vpop.permute.xlu1 %1555 }
 0x525   : > { %1848 = vmatprep.mubr.msk.bf16.mxu1 %vm511_vm4, %v2186_v10 }
 0x527   : > { %v1561_v56 = vpop.permute.xlu0 %1560 }
 0x528   : > { %v1566_v24 = vpop.permute.xlu1 %1565 }
 0x52b   : > { %v1571_v3 = vpop.permute.xlu0 %1570 }
 0x52c   : > { %1662 = vmatmul.mubr.bf16.gmra.mrb[4].mxu1 %v2188_v18 }
 0x5f7   : > { %v1643_v57 = vpop.f32.mrb[0].mxu0  ;;  %v1653_v59 = vpop.f32.mrb[0].mxu1 }
 0x5f8   : > { %v1644_v61 = vadd.f32 %v1643_v57, %v1546_v39  ;;  %v1654_v2 = vadd.f32 %v1653_v59, %v1556_v55  ;;  %v1645_v37 = vpop.f32.mrb[1].mxu0  ;;  %v1655_v35 = vpop.f32.mrb[1].mxu1 }
 0x5f9   : > { %v1646_v43 = vadd.f32 %v1645_v37, %v1546_v39  ;;  %v1656_v23 = vadd.f32 %v1655_v35, %v1556_v55  ;;  %v1647_v33 = vpop.f32.mrb[2].mxu0  ;;  %v1657_v62 = vpop.f32.mrb[2].mxu1 }
 0x5fa   : > { %1672 = vst [vmem:[%s2434_s30] sm:$0xff] %v1644_v61  ;;  %1676 = vst [vmem:[%s2434_s30 + $0x20] sm:$0xff] %v1654_v2  ;;  %v1648_v22 = vadd.f32 %v1647_v33, %v1551_v38  ;;  %v1658_v58 = vadd.f32 %v1657_v62, %v1561_v56  ;;  %v1649_v63 = vpop.f32.mrb[3].mxu0  ;;  %v1659_v42 = vpop.f32.mrb[3].mxu1 }
 0x5fb   : > { %1673 = vst [vmem:[%s2434_s30 + $0x8] sm:$0xff] %v1646_v43  ;;  %1677 = vst [vmem:[%s2434_s30 + $0x28] sm:$0xff] %v1656_v23  ;;  %v1650_v16 = vadd.f32 %v1649_v63, %v1551_v38  ;;  %v1660_v14 = vadd.f32 %v1659_v42, %v1561_v56 }
 0x5fc   : > { %1674 = vst [vmem:[%s2434_s30 + $0x10] sm:$0xff] %v1648_v22  ;;  %1678 = vst [vmem:[%s2434_s30 + $0x30] sm:$0xff] %v1658_v58 }
 0x5fd   : > { %1675 = vst [vmem:[%s2434_s30 + $0x18] sm:$0xff] %v1650_v16  ;;  %1679 = vst [vmem:[%s2434_s30 + $0x38] sm:$0xff] %v1660_v14 }
 0x5ff   : > { %v1663_v45 = vpop.f32.mrb[4].mxu1 }
 0x600   : > { %v1664_v13 = vadd.f32 %v1663_v45, %v1566_v24  ;;  %v1665_v21 = vpop.f32.mrb[5].mxu1 }
 0x601   : > { %v1666_v12 = vadd.f32 %v1665_v21, %v1566_v24  ;;  %v1667_v8 = vpop.f32.mrb[6].mxu1 }
 0x602   : > { %1680 = vst [vmem:[%s2434_s30 + $0x40] sm:$0xff] %v1664_v13  ;;  %v1668_v15 = vadd.f32 %v1667_v8, %v1571_v3  ;;  %v1669_v34 = vpop.f32.mrb[7].mxu1 }
 0x603   : > { %1681 = vst [vmem:[%s2434_s30 + $0x48] sm:$0xff] %v1666_v12  ;;  %v1670_v47 = vadd.f32 %v1669_v34, %v1571_v3 }
 0x604   : > { %1682 = vst [vmem:[%s2434_s30 + $0x50] sm:$0xff] %v1668_v15 }
 0x605   : > { %1683 = vst [vmem:[%s2434_s30 + $0x58] sm:$0xff] %v1670_v47 }
 0x606 PF: > { %s22_s21 = sadd.s32 1, %s2311_s21  }
 0x607   : > { %p19_p5 = scmp.ge.s32.totalorder %s22_s21, 4  }
 0x609   :  { %21 = sbr.rel (!%p19_p5) target bundleno = 1 (0x1), region = 119 }

</bundles_post_ra>
